<compile_context>
chip_gen: v5e
topology: v5e:2x2
jax: 0.10.0
libtpu: 0.0.40
codegen_flags: <defaults>
</compile_context>

<pallas_src>
import jax
import jax.numpy as jnp
from jax import lax
from jax.experimental import pallas as pl
from jax.experimental.pallas import tpu as pltpu


_VMEM_SPEC = pl.BlockSpec(memory_space=pltpu.MemorySpace.VMEM)


# ----------------------------- Pallas kernel ------------------------------- #

def make_fused_lstm_fc_kernel(num_layers, T, B_pad, H):
    """Fused wavefront multi-layer LSTM + FC-on-last-step kernel.

    Ref order (positional):
      x_ref                          (T*B_pad, D)     rows t*B_pad + b
      layer 0: w_ih0 (D, 4H), w_hh0 (H, 4H), b0 (1, 4H)        [gate-scaled]
      layers l>=1: w_cat_l (2H, 4H) = [W_ih_l ; W_hh_l], b_l (1, 4H)
      fc_w (H, O_pad), fc_b (1, O_pad)
      out_ref (B_pad, O_pad)
      scratch: gx_scr (T*B_pad, 4H) f32   -- hoisted layer-0 input projection
    """

    def kernel(*refs):
        x_ref = refs[0]
        idx = 1
        w_ih0_ref, w_hh0_ref, b0_ref = refs[idx], refs[idx + 1], refs[idx + 2]
        idx += 3
        wcat_refs, bcat_refs = [], []
        for _ in range(num_layers - 1):
            wcat_refs.append(refs[idx])
            bcat_refs.append(refs[idx + 1])
            idx += 2
        fcw_ref, fcb_ref = refs[idx], refs[idx + 1]
        idx += 2
        out_ref = refs[idx]
        gx_scr = refs[idx + 1]                     # (T*B_pad, 4H)

        # Hoisted layer-0 input projection: one big MXU matmul for the sequence.
        gx_scr[...] = (
            jnp.dot(x_ref[...], w_ih0_ref[...], preferred_element_type=jnp.float32)
            + b0_ref[...]
        )

        # Loop-invariant recurrent weights, loaded once (a few vregs each).
        w_hh0 = w_hh0_ref[...]                     # (H, 4H), gate-scaled
        w_cat = [r[...] for r in wcat_refs]        # (2H, 4H) each, gate-scaled
        b_cat = [r[...] for r in bcat_refs]        # (1, 4H)

        def cell(gates, c):
            # Single tanh over the packed (B_pad, 4H) gates; sigmoid(x) is
            # 0.5*(tanh(x/2)+1) with the x/2 pre-scale folded into the i/f/o
            # weight/bias columns in the wrapper -> 2 EUP pushes per step.
            tg = jnp.tanh(gates)
            i_a = 0.5 * tg[:, 0 * H:1 * H] + 0.5
            f_a = 0.5 * tg[:, 1 * H:2 * H] + 0.5
            g_a = tg[:, 2 * H:3 * H]
            o_a = 0.5 * tg[:, 3 * H:4 * H] + 0.5
            c_new = f_a * c + i_a * g_a
            h_new = o_a * jnp.tanh(c_new)
            return h_new, c_new

        zeros = jnp.zeros((B_pad, H), jnp.float32)
        h = [zeros] * num_layers
        c = [zeros] * num_layers

        # Wavefront schedule: iteration s computes layer l's step (s - l).
        # Layer l>=1 reads layer l-1's hidden state from the *previous* iteration
        # (old_h), so the per-iteration updates across layers are independent and
        # their MXU/EUP latencies overlap.  T is small & static -> fully unrolled.
        for s in range(T + num_layers - 1):
            old_h = list(h)
            for l in range(num_layers):
                t = s - l
                if not (0 <= t < T):
                    continue
                if l == 0:
                    gates = gx_scr[pl.ds(t * B_pad, B_pad), :] + jnp.dot(
                        old_h[0], w_hh0, preferred_element_type=jnp.float32)
                else:
                    # ONE fused matmul for input + recurrent projections.
                    lhs = jnp.concatenate([old_h[l - 1], old_h[l]], axis=-1)
                    gates = jnp.dot(
                        lhs, w_cat[l - 1], preferred_element_type=jnp.float32
                    ) + b_cat[l - 1]
                h[l], c[l] = cell(gates, c[l])

        # Fused FC head on the final layer's last hidden state.
        # O is lane-padded to 128 in the wrapper -> unmasked lane-dense store.
        out_ref[...] = (
            jnp.dot(h[num_layers - 1], fcw_ref[...],
                    preferred_element_type=jnp.float32)
            + fcb_ref[...]
        ).astype(out_ref.dtype)

    return kernel


# ------------------------------ Wrappers ----------------------------------- #

def init_params(key, input_size, hidden_size, num_layers, output_size):
    """Deterministic synthetic params, PyTorch-shaped (uniform +/- 1/sqrt(H))."""
    k = 1.0 / jnp.sqrt(jnp.float32(hidden_size))
    params = {"layers": []}
    for layer in range(num_layers):
        in_dim = input_size if layer == 0 else hidden_size
        key, k1, k2, k3, k4 = jax.random.split(key, 5)
        params["layers"].append({
            # PyTorch shapes: weight_ih (4H, in_dim), weight_hh (4H, H),
            # bias_ih / bias_hh (4H,). Gate order: i, f, g, o.
            "w_ih": jax.random.uniform(k1, (4 * hidden_size, in_dim), jnp.float32, -k, k),
            "w_hh": jax.random.uniform(k2, (4 * hidden_size, hidden_size), jnp.float32, -k, k),
            "b_ih": jax.random.uniform(k3, (4 * hidden_size,), jnp.float32, -k, k),
            "b_hh": jax.random.uniform(k4, (4 * hidden_size,), jnp.float32, -k, k),
        })
    key, k1, k2 = jax.random.split(key, 3)
    params["fc_w"] = jax.random.uniform(k1, (output_size, hidden_size), jnp.float32, -k, k)
    params["fc_b"] = jax.random.uniform(k2, (output_size,), jnp.float32, -k, k)
    return params


@jax.jit
def lstm_model_forward(x, params):
    """x: (B, T, input_size) batch_first, like the PyTorch module."""
    B, T, D = x.shape
    H = params["layers"][0]["w_hh"].shape[1]
    O = params["fc_w"].shape[0]
    num_layers = len(params["layers"])
    B_pad = ((B + 7) // 8) * 8            # sublane-aligned batch rows
    O_pad = ((O + 127) // 128) * 128      # lane-dense FC output store

    # Time-major, batch padded, flattened to 2D rows (t * B_pad + b).
    xt = jnp.transpose(x.astype(jnp.float32), (1, 0, 2))        # (T, B, D)
    xt = jnp.pad(xt, ((0, 0), (0, B_pad - B), (0, 0)))
    x2d = xt.reshape(T * B_pad, D)

    # Fold the sigmoid half-scaling into the gate weight columns (i, f, o gates).
    col_scale = jnp.concatenate([
        jnp.full((H,), 0.5, jnp.float32),   # i
        jnp.full((H,), 0.5, jnp.float32),   # f
        jnp.ones((H,), jnp.float32),        # g
        jnp.full((H,), 0.5, jnp.float32),   # o
    ])

    weight_args = []
    lp0 = params["layers"][0]
    weight_args.append(jnp.transpose(lp0["w_ih"]) * col_scale)               # (D, 4H)
    weight_args.append(jnp.transpose(lp0["w_hh"]) * col_scale)               # (H, 4H)
    weight_args.append(((lp0["b_ih"] + lp0["b_hh"]) * col_scale)[None, :])   # (1, 4H)
    for lp in params["layers"][1:]:
        # Stacked [W_ih ; W_hh] so the per-step layer>=1 work is ONE matmul.
        w_cat = jnp.concatenate(
            [jnp.transpose(lp["w_ih"]), jnp.transpose(lp["w_hh"])], axis=0)  # (2H, 4H)
        weight_args.append(w_cat * col_scale)
        weight_args.append(((lp["b_ih"] + lp["b_hh"]) * col_scale)[None, :])

    fc_w_t = jnp.pad(jnp.transpose(params["fc_w"]), ((0, 0), (0, O_pad - O)))  # (H, O_pad)
    fc_b = jnp.pad(params["fc_b"], (0, O_pad - O))[None, :]                    # (1, O_pad)

    # Advisory cost estimate for XLA scheduling around the custom call.
    flops = (2 * T * B_pad * D * 4 * H                       # hoisted projection
             + 2 * T * B_pad * H * 4 * H                     # layer-0 recurrence
             + (num_layers - 1) * 2 * T * B_pad * 2 * H * 4 * H   # fused layers>=1
             + 2 * B_pad * H * O_pad)                        # FC head
    transcendentals = num_layers * T * B_pad * 5 * H
    bytes_accessed = 4 * (x2d.size + sum(w.size for w in weight_args)
                          + fc_w_t.size + fc_b.size + B_pad * O_pad)

    kernel = make_fused_lstm_fc_kernel(num_layers, T, B_pad, H)
    n_in = 1 + len(weight_args) + 2
    out = pl.pallas_call(
        kernel,
        out_shape=jax.ShapeDtypeStruct((B_pad, O_pad), jnp.float32),
        in_specs=[_VMEM_SPEC] * n_in,
        out_specs=_VMEM_SPEC,
        scratch_shapes=[
            pltpu.VMEM((T * B_pad, 4 * H), jnp.float32),   # hoisted layer-0 gates
        ],
        cost_estimate=pl.CostEstimate(
            flops=int(flops),
            transcendentals=int(transcendentals),
            bytes_accessed=int(bytes_accessed)),
    )(x2d, *weight_args, fc_w_t, fc_b)
    return out[:B, :O]


# ------------------------ Pure-JAX reference (check) ------------------------ #

def lstm_model_reference(x, params):
    B = x.shape[0]
    H = params["layers"][0]["w_hh"].shape[1]
    seq = jnp.transpose(x, (1, 0, 2)).astype(jnp.float32)
    for lp in params["layers"]:
        w_ih_t, w_hh_t = jnp.transpose(lp["w_ih"]), jnp.transpose(lp["w_hh"])
        bias = lp["b_ih"] + lp["b_hh"]

        def cell(carry, x_t):
            h, c = carry
            gates = x_t @ w_ih_t + h @ w_hh_t + bias
            i, f, g, o = jnp.split(gates, 4, axis=-1)
            c = jax.nn.sigmoid(f) * c + jax.nn.sigmoid(i) * jnp.tanh(g)
            h = jax.nn.sigmoid(o) * jnp.tanh(c)
            return (h, c), h

        init = (jnp.zeros((B, H), jnp.float32), jnp.zeros((B, H), jnp.float32))
        _, seq = lax.scan(cell, init, seq)
    return seq[-1] @ jnp.transpose(params["fc_w"]) + params["fc_b"]


# --------------------------------- Main ------------------------------------ #

if __name__ == "__main__":
    batch, seq_len = 2, 8
    input_size, hidden_size, num_layers, output_size = 16, 32, 2, 8

    key = jax.random.PRNGKey(0)
    key, xk = jax.random.split(key)
    x = jax.random.normal(xk, (batch, seq_len, input_size), jnp.float32)
    params = init_params(key, input_size, hidden_size, num_layers, output_size)

    out = lstm_model_forward(x, params)
    out = jax.block_until_ready(out)

    ref = lstm_model_reference(x, params)
    assert out.shape == (batch, output_size), out.shape
    assert jnp.allclose(out, ref, atol=1e-4, rtol=1e-4), (
        f"max abs err {jnp.max(jnp.abs(out - ref))}")

    print("KERNEL_OK")
</pallas_src>

<mosaic_0001>
module attributes {stable_mosaic.version = 11 : i64} {
  func.func @kernel(%arg0: memref<64x16xf32, #tpu.memory_space<vmem>>, %arg1: memref<16x128xf32, #tpu.memory_space<vmem>>, %arg2: memref<32x128xf32, #tpu.memory_space<vmem>>, %arg3: memref<1x128xf32, #tpu.memory_space<vmem>>, %arg4: memref<64x128xf32, #tpu.memory_space<vmem>>, %arg5: memref<1x128xf32, #tpu.memory_space<vmem>>, %arg6: memref<32x128xf32, #tpu.memory_space<vmem>>, %arg7: memref<1x128xf32, #tpu.memory_space<vmem>>, %arg8: memref<8x128xf32, #tpu.memory_space<vmem>>, %arg9: memref<64x128xf32, #tpu.memory_space<vmem>>) attributes {dimension_semantics = [], scalar_prefetch = 0 : i64, scratch_operands = 1 : i64, tpu.core_type = #tpu.core_type<tc>} {
    %c0 = arith.constant 0 : index
    %c0_0 = arith.constant 0 : index
    %0 = vector.load %arg0[%c0, %c0_0] : memref<64x16xf32, #tpu.memory_space<vmem>>, vector<64x16xf32>
    %c0_1 = arith.constant 0 : index
    %c0_2 = arith.constant 0 : index
    %1 = vector.load %arg1[%c0_1, %c0_2] : memref<16x128xf32, #tpu.memory_space<vmem>>, vector<16x128xf32>
    %cst = arith.constant dense<0.000000e+00> : vector<64x128xf32>
    %2 = tpu.matmul %0, %1, %cst {dimension_numbers = #tpu.dot_dimension_numbers<[1], [0], [0], [1], [0, 0, 1, 1], [], []>} : vector<64x16xf32>, vector<16x128xf32>, vector<64x128xf32> -> vector<64x128xf32>
    %c0_3 = arith.constant 0 : index
    %c0_4 = arith.constant 0 : index
    %3 = vector.load %arg3[%c0_3, %c0_4] : memref<1x128xf32, #tpu.memory_space<vmem>>, vector<1x128xf32>
    %4 = vector.broadcast %3 : vector<1x128xf32> to vector<64x128xf32>
    %5 = arith.addf %2, %4 : vector<64x128xf32>
    %c0_5 = arith.constant 0 : index
    %c0_6 = arith.constant 0 : index
    %6 = vector.load %arg9[%c0_5, %c0_6] : memref<64x128xf32, #tpu.memory_space<vmem>>, vector<64x128xf32>
    tpu.vector_store %arg9[%c0_5, %c0_6], %5 {strides = array<i32>} : memref<64x128xf32, #tpu.memory_space<vmem>>, vector<64x128xf32>,
    %c0_7 = arith.constant 0 : index
    %c0_8 = arith.constant 0 : index
    %7 = vector.load %arg2[%c0_7, %c0_8] : memref<32x128xf32, #tpu.memory_space<vmem>>, vector<32x128xf32>
    %c0_9 = arith.constant 0 : index
    %c0_10 = arith.constant 0 : index
    %8 = vector.load %arg4[%c0_9, %c0_10] : memref<64x128xf32, #tpu.memory_space<vmem>>, vector<64x128xf32>
    %c0_11 = arith.constant 0 : index
    %c0_12 = arith.constant 0 : index
    %9 = vector.load %arg5[%c0_11, %c0_12] : memref<1x128xf32, #tpu.memory_space<vmem>>, vector<1x128xf32>
    %cst_13 = arith.constant 0.000000e+00 : f32
    %10 = vector.broadcast %cst_13 : f32 to vector<8x32xf32>
    %c0_14 = arith.constant 0 : index
    %c0_15 = arith.constant 0 : index
    %11 = vector.load %arg9[%c0_14, %c0_15] : memref<64x128xf32, #tpu.memory_space<vmem>>, vector<8x128xf32>
    %cst_16 = arith.constant dense<0.000000e+00> : vector<8x128xf32>
    %12 = tpu.matmul %10, %7, %cst_16 {dimension_numbers = #tpu.dot_dimension_numbers<[1], [0], [0], [1], [0, 0, 1, 1], [], []>} : vector<8x32xf32>, vector<32x128xf32>, vector<8x128xf32> -> vector<8x128xf32>
    %13 = arith.addf %11, %12 : vector<8x128xf32>
    %14 = math.tanh %13 : vector<8x128xf32>
    %15 = vector.extract_strided_slice %14 {offsets = [0, 0], sizes = [8, 32], strides = [1, 1]} : vector<8x128xf32> to vector<8x32xf32>
    %cst_17 = arith.constant 5.000000e-01 : f32
    %16 = vector.broadcast %cst_17 : f32 to vector<8x32xf32>
    %17 = arith.mulf %16, %15 : vector<8x32xf32>
    %cst_18 = arith.constant 5.000000e-01 : f32
    %18 = vector.broadcast %cst_18 : f32 to vector<8x32xf32>
    %19 = arith.addf %17, %18 : vector<8x32xf32>
    %20 = vector.extract_strided_slice %14 {offsets = [0, 32], sizes = [8, 32], strides = [1, 1]} : vector<8x128xf32> to vector<8x32xf32>
    %cst_19 = arith.constant 5.000000e-01 : f32
    %21 = vector.broadcast %cst_19 : f32 to vector<8x32xf32>
    %22 = arith.mulf %21, %20 : vector<8x32xf32>
    %cst_20 = arith.constant 5.000000e-01 : f32
    %23 = vector.broadcast %cst_20 : f32 to vector<8x32xf32>
    %24 = arith.addf %22, %23 : vector<8x32xf32>
    %25 = vector.extract_strided_slice %14 {offsets = [0, 64], sizes = [8, 32], strides = [1, 1]} : vector<8x128xf32> to vector<8x32xf32>
    %26 = vector.extract_strided_slice %14 {offsets = [0, 96], sizes = [8, 32], strides = [1, 1]} : vector<8x128xf32> to vector<8x32xf32>
    %cst_21 = arith.constant 5.000000e-01 : f32
    %27 = vector.broadcast %cst_21 : f32 to vector<8x32xf32>
    %28 = arith.mulf %27, %26 : vector<8x32xf32>
    %cst_22 = arith.constant 5.000000e-01 : f32
    %29 = vector.broadcast %cst_22 : f32 to vector<8x32xf32>
    %30 = arith.addf %28, %29 : vector<8x32xf32>
    %31 = arith.mulf %24, %10 : vector<8x32xf32>
    %32 = arith.mulf %19, %25 : vector<8x32xf32>
    %33 = arith.addf %31, %32 : vector<8x32xf32>
    %34 = math.tanh %33 : vector<8x32xf32>
    %35 = arith.mulf %30, %34 : vector<8x32xf32>
    %c8 = arith.constant 8 : index
    %c0_23 = arith.constant 0 : index
    %36 = vector.load %arg9[%c8, %c0_23] : memref<64x128xf32, #tpu.memory_space<vmem>>, vector<8x128xf32>
    %cst_24 = arith.constant dense<0.000000e+00> : vector<8x128xf32>
    %37 = tpu.matmul %35, %7, %cst_24 {dimension_numbers = #tpu.dot_dimension_numbers<[1], [0], [0], [1], [0, 0, 1, 1], [], []>} : vector<8x32xf32>, vector<32x128xf32>, vector<8x128xf32> -> vector<8x128xf32>
    %38 = arith.addf %36, %37 : vector<8x128xf32>
    %39 = math.tanh %38 : vector<8x128xf32>
    %40 = vector.extract_strided_slice %39 {offsets = [0, 0], sizes = [8, 32], strides = [1, 1]} : vector<8x128xf32> to vector<8x32xf32>
    %cst_25 = arith.constant 5.000000e-01 : f32
    %41 = vector.broadcast %cst_25 : f32 to vector<8x32xf32>
    %42 = arith.mulf %41, %40 : vector<8x32xf32>
    %cst_26 = arith.constant 5.000000e-01 : f32
    %43 = vector.broadcast %cst_26 : f32 to vector<8x32xf32>
    %44 = arith.addf %42, %43 : vector<8x32xf32>
    %45 = vector.extract_strided_slice %39 {offsets = [0, 32], sizes = [8, 32], strides = [1, 1]} : vector<8x128xf32> to vector<8x32xf32>
    %cst_27 = arith.constant 5.000000e-01 : f32
    %46 = vector.broadcast %cst_27 : f32 to vector<8x32xf32>
    %47 = arith.mulf %46, %45 : vector<8x32xf32>
    %cst_28 = arith.constant 5.000000e-01 : f32
    %48 = vector.broadcast %cst_28 : f32 to vector<8x32xf32>
    %49 = arith.addf %47, %48 : vector<8x32xf32>
    %50 = vector.extract_strided_slice %39 {offsets = [0, 64], sizes = [8, 32], strides = [1, 1]} : vector<8x128xf32> to vector<8x32xf32>
    %51 = vector.extract_strided_slice %39 {offsets = [0, 96], sizes = [8, 32], strides = [1, 1]} : vector<8x128xf32> to vector<8x32xf32>
    %cst_29 = arith.constant 5.000000e-01 : f32
    %52 = vector.broadcast %cst_29 : f32 to vector<8x32xf32>
    %53 = arith.mulf %52, %51 : vector<8x32xf32>
    %cst_30 = arith.constant 5.000000e-01 : f32
    %54 = vector.broadcast %cst_30 : f32 to vector<8x32xf32>
    %55 = arith.addf %53, %54 : vector<8x32xf32>
    %56 = arith.mulf %49, %33 : vector<8x32xf32>
    %57 = arith.mulf %44, %50 : vector<8x32xf32>
    %58 = arith.addf %56, %57 : vector<8x32xf32>
    %59 = math.tanh %58 : vector<8x32xf32>
    %60 = arith.mulf %55, %59 : vector<8x32xf32>
    %61 = tpu.concatenate %35, %10 in 1 : vector<8x32xf32>, vector<8x32xf32> -> vector<8x64xf32>
    %cst_31 = arith.constant dense<0.000000e+00> : vector<8x128xf32>
    %62 = tpu.matmul %61, %8, %cst_31 {dimension_numbers = #tpu.dot_dimension_numbers<[1], [0], [0], [1], [0, 0, 1, 1], [], []>} : vector<8x64xf32>, vector<64x128xf32>, vector<8x128xf32> -> vector<8x128xf32>
    %63 = vector.broadcast %9 : vector<1x128xf32> to vector<8x128xf32>
    %64 = arith.addf %62, %63 : vector<8x128xf32>
    %65 = math.tanh %64 : vector<8x128xf32>
    %66 = vector.extract_strided_slice %65 {offsets = [0, 0], sizes = [8, 32], strides = [1, 1]} : vector<8x128xf32> to vector<8x32xf32>
    %cst_32 = arith.constant 5.000000e-01 : f32
    %67 = vector.broadcast %cst_32 : f32 to vector<8x32xf32>
    %68 = arith.mulf %67, %66 : vector<8x32xf32>
    %cst_33 = arith.constant 5.000000e-01 : f32
    %69 = vector.broadcast %cst_33 : f32 to vector<8x32xf32>
    %70 = arith.addf %68, %69 : vector<8x32xf32>
    %71 = vector.extract_strided_slice %65 {offsets = [0, 32], sizes = [8, 32], strides = [1, 1]} : vector<8x128xf32> to vector<8x32xf32>
    %cst_34 = arith.constant 5.000000e-01 : f32
    %72 = vector.broadcast %cst_34 : f32 to vector<8x32xf32>
    %73 = arith.mulf %72, %71 : vector<8x32xf32>
    %cst_35 = arith.constant 5.000000e-01 : f32
    %74 = vector.broadcast %cst_35 : f32 to vector<8x32xf32>
    %75 = arith.addf %73, %74 : vector<8x32xf32>
    %76 = vector.extract_strided_slice %65 {offsets = [0, 64], sizes = [8, 32], strides = [1, 1]} : vector<8x128xf32> to vector<8x32xf32>
    %77 = vector.extract_strided_slice %65 {offsets = [0, 96], sizes = [8, 32], strides = [1, 1]} : vector<8x128xf32> to vector<8x32xf32>
    %cst_36 = arith.constant 5.000000e-01 : f32
    %78 = vector.broadcast %cst_36 : f32 to vector<8x32xf32>
    %79 = arith.mulf %78, %77 : vector<8x32xf32>
    %cst_37 = arith.constant 5.000000e-01 : f32
    %80 = vector.broadcast %cst_37 : f32 to vector<8x32xf32>
    %81 = arith.addf %79, %80 : vector<8x32xf32>
    %82 = arith.mulf %75, %10 : vector<8x32xf32>
    %83 = arith.mulf %70, %76 : vector<8x32xf32>
    %84 = arith.addf %82, %83 : vector<8x32xf32>
    %85 = math.tanh %84 : vector<8x32xf32>
    %86 = arith.mulf %81, %85 : vector<8x32xf32>
    %c16 = arith.constant 16 : index
    %c0_38 = arith.constant 0 : index
    %87 = vector.load %arg9[%c16, %c0_38] : memref<64x128xf32, #tpu.memory_space<vmem>>, vector<8x128xf32>
    %cst_39 = arith.constant dense<0.000000e+00> : vector<8x128xf32>
    %88 = tpu.matmul %60, %7, %cst_39 {dimension_numbers = #tpu.dot_dimension_numbers<[1], [0], [0], [1], [0, 0, 1, 1], [], []>} : vector<8x32xf32>, vector<32x128xf32>, vector<8x128xf32> -> vector<8x128xf32>
    %89 = arith.addf %87, %88 : vector<8x128xf32>
    %90 = math.tanh %89 : vector<8x128xf32>
    %91 = vector.extract_strided_slice %90 {offsets = [0, 0], sizes = [8, 32], strides = [1, 1]} : vector<8x128xf32> to vector<8x32xf32>
    %cst_40 = arith.constant 5.000000e-01 : f32
    %92 = vector.broadcast %cst_40 : f32 to vector<8x32xf32>
    %93 = arith.mulf %92, %91 : vector<8x32xf32>
    %cst_41 = arith.constant 5.000000e-01 : f32
    %94 = vector.broadcast %cst_41 : f32 to vector<8x32xf32>
    %95 = arith.addf %93, %94 : vector<8x32xf32>
    %96 = vector.extract_strided_slice %90 {offsets = [0, 32], sizes = [8, 32], strides = [1, 1]} : vector<8x128xf32> to vector<8x32xf32>
    %cst_42 = arith.constant 5.000000e-01 : f32
    %97 = vector.broadcast %cst_42 : f32 to vector<8x32xf32>
    %98 = arith.mulf %97, %96 : vector<8x32xf32>
    %cst_43 = arith.constant 5.000000e-01 : f32
    %99 = vector.broadcast %cst_43 : f32 to vector<8x32xf32>
    %100 = arith.addf %98, %99 : vector<8x32xf32>
    %101 = vector.extract_strided_slice %90 {offsets = [0, 64], sizes = [8, 32], strides = [1, 1]} : vector<8x128xf32> to vector<8x32xf32>
    %102 = vector.extract_strided_slice %90 {offsets = [0, 96], sizes = [8, 32], strides = [1, 1]} : vector<8x128xf32> to vector<8x32xf32>
    %cst_44 = arith.constant 5.000000e-01 : f32
    %103 = vector.broadcast %cst_44 : f32 to vector<8x32xf32>
    %104 = arith.mulf %103, %102 : vector<8x32xf32>
    %cst_45 = arith.constant 5.000000e-01 : f32
    %105 = vector.broadcast %cst_45 : f32 to vector<8x32xf32>
    %106 = arith.addf %104, %105 : vector<8x32xf32>
    %107 = arith.mulf %100, %58 : vector<8x32xf32>
    %108 = arith.mulf %95, %101 : vector<8x32xf32>
    %109 = arith.addf %107, %108 : vector<8x32xf32>
    %110 = math.tanh %109 : vector<8x32xf32>
    %111 = arith.mulf %106, %110 : vector<8x32xf32>
    %112 = tpu.concatenate %60, %86 in 1 : vector<8x32xf32>, vector<8x32xf32> -> vector<8x64xf32>
    %cst_46 = arith.constant dense<0.000000e+00> : vector<8x128xf32>
    %113 = tpu.matmul %112, %8, %cst_46 {dimension_numbers = #tpu.dot_dimension_numbers<[1], [0], [0], [1], [0, 0, 1, 1], [], []>} : vector<8x64xf32>, vector<64x128xf32>, vector<8x128xf32> -> vector<8x128xf32>
    %114 = vector.broadcast %9 : vector<1x128xf32> to vector<8x128xf32>
    %115 = arith.addf %113, %114 : vector<8x128xf32>
    %116 = math.tanh %115 : vector<8x128xf32>
    %117 = vector.extract_strided_slice %116 {offsets = [0, 0], sizes = [8, 32], strides = [1, 1]} : vector<8x128xf32> to vector<8x32xf32>
    %cst_47 = arith.constant 5.000000e-01 : f32
    %118 = vector.broadcast %cst_47 : f32 to vector<8x32xf32>
    %119 = arith.mulf %118, %117 : vector<8x32xf32>
    %cst_48 = arith.constant 5.000000e-01 : f32
    %120 = vector.broadcast %cst_48 : f32 to vector<8x32xf32>
    %121 = arith.addf %119, %120 : vector<8x32xf32>
    %122 = vector.extract_strided_slice %116 {offsets = [0, 32], sizes = [8, 32], strides = [1, 1]} : vector<8x128xf32> to vector<8x32xf32>
    %cst_49 = arith.constant 5.000000e-01 : f32
    %123 = vector.broadcast %cst_49 : f32 to vector<8x32xf32>
    %124 = arith.mulf %123, %122 : vector<8x32xf32>
    %cst_50 = arith.constant 5.000000e-01 : f32
    %125 = vector.broadcast %cst_50 : f32 to vector<8x32xf32>
    %126 = arith.addf %124, %125 : vector<8x32xf32>
    %127 = vector.extract_strided_slice %116 {offsets = [0, 64], sizes = [8, 32], strides = [1, 1]} : vector<8x128xf32> to vector<8x32xf32>
    %128 = vector.extract_strided_slice %116 {offsets = [0, 96], sizes = [8, 32], strides = [1, 1]} : vector<8x128xf32> to vector<8x32xf32>
    %cst_51 = arith.constant 5.000000e-01 : f32
    %129 = vector.broadcast %cst_51 : f32 to vector<8x32xf32>
    %130 = arith.mulf %129, %128 : vector<8x32xf32>
    %cst_52 = arith.constant 5.000000e-01 : f32
    %131 = vector.broadcast %cst_52 : f32 to vector<8x32xf32>
    %132 = arith.addf %130, %131 : vector<8x32xf32>
    %133 = arith.mulf %126, %84 : vector<8x32xf32>
    %134 = arith.mulf %121, %127 : vector<8x32xf32>
    %135 = arith.addf %133, %134 : vector<8x32xf32>
    %136 = math.tanh %135 : vector<8x32xf32>
    %137 = arith.mulf %132, %136 : vector<8x32xf32>
    %c24 = arith.constant 24 : index
    %c0_53 = arith.constant 0 : index
    %138 = vector.load %arg9[%c24, %c0_53] : memref<64x128xf32, #tpu.memory_space<vmem>>, vector<8x128xf32>
    %cst_54 = arith.constant dense<0.000000e+00> : vector<8x128xf32>
    %139 = tpu.matmul %111, %7, %cst_54 {dimension_numbers = #tpu.dot_dimension_numbers<[1], [0], [0], [1], [0, 0, 1, 1], [], []>} : vector<8x32xf32>, vector<32x128xf32>, vector<8x128xf32> -> vector<8x128xf32>
    %140 = arith.addf %138, %139 : vector<8x128xf32>
    %141 = math.tanh %140 : vector<8x128xf32>
    %142 = vector.extract_strided_slice %141 {offsets = [0, 0], sizes = [8, 32], strides = [1, 1]} : vector<8x128xf32> to vector<8x32xf32>
    %cst_55 = arith.constant 5.000000e-01 : f32
    %143 = vector.broadcast %cst_55 : f32 to vector<8x32xf32>
    %144 = arith.mulf %143, %142 : vector<8x32xf32>
    %cst_56 = arith.constant 5.000000e-01 : f32
    %145 = vector.broadcast %cst_56 : f32 to vector<8x32xf32>
    %146 = arith.addf %144, %145 : vector<8x32xf32>
    %147 = vector.extract_strided_slice %141 {offsets = [0, 32], sizes = [8, 32], strides = [1, 1]} : vector<8x128xf32> to vector<8x32xf32>
    %cst_57 = arith.constant 5.000000e-01 : f32
    %148 = vector.broadcast %cst_57 : f32 to vector<8x32xf32>
    %149 = arith.mulf %148, %147 : vector<8x32xf32>
    %cst_58 = arith.constant 5.000000e-01 : f32
    %150 = vector.broadcast %cst_58 : f32 to vector<8x32xf32>
    %151 = arith.addf %149, %150 : vector<8x32xf32>
    %152 = vector.extract_strided_slice %141 {offsets = [0, 64], sizes = [8, 32], strides = [1, 1]} : vector<8x128xf32> to vector<8x32xf32>
    %153 = vector.extract_strided_slice %141 {offsets = [0, 96], sizes = [8, 32], strides = [1, 1]} : vector<8x128xf32> to vector<8x32xf32>
    %cst_59 = arith.constant 5.000000e-01 : f32
    %154 = vector.broadcast %cst_59 : f32 to vector<8x32xf32>
    %155 = arith.mulf %154, %153 : vector<8x32xf32>
    %cst_60 = arith.constant 5.000000e-01 : f32
    %156 = vector.broadcast %cst_60 : f32 to vector<8x32xf32>
    %157 = arith.addf %155, %156 : vector<8x32xf32>
    %158 = arith.mulf %151, %109 : vector<8x32xf32>
    %159 = arith.mulf %146, %152 : vector<8x32xf32>
    %160 = arith.addf %158, %159 : vector<8x32xf32>
    %161 = math.tanh %160 : vector<8x32xf32>
    %162 = arith.mulf %157, %161 : vector<8x32xf32>
    %163 = tpu.concatenate %111, %137 in 1 : vector<8x32xf32>, vector<8x32xf32> -> vector<8x64xf32>
    %cst_61 = arith.constant dense<0.000000e+00> : vector<8x128xf32>
    %164 = tpu.matmul %163, %8, %cst_61 {dimension_numbers = #tpu.dot_dimension_numbers<[1], [0], [0], [1], [0, 0, 1, 1], [], []>} : vector<8x64xf32>, vector<64x128xf32>, vector<8x128xf32> -> vector<8x128xf32>
    %165 = vector.broadcast %9 : vector<1x128xf32> to vector<8x128xf32>
    %166 = arith.addf %164, %165 : vector<8x128xf32>
    %167 = math.tanh %166 : vector<8x128xf32>
    %168 = vector.extract_strided_slice %167 {offsets = [0, 0], sizes = [8, 32], strides = [1, 1]} : vector<8x128xf32> to vector<8x32xf32>
    %cst_62 = arith.constant 5.000000e-01 : f32
    %169 = vector.broadcast %cst_62 : f32 to vector<8x32xf32>
    %170 = arith.mulf %169, %168 : vector<8x32xf32>
    %cst_63 = arith.constant 5.000000e-01 : f32
    %171 = vector.broadcast %cst_63 : f32 to vector<8x32xf32>
    %172 = arith.addf %170, %171 : vector<8x32xf32>
    %173 = vector.extract_strided_slice %167 {offsets = [0, 32], sizes = [8, 32], strides = [1, 1]} : vector<8x128xf32> to vector<8x32xf32>
    %cst_64 = arith.constant 5.000000e-01 : f32
    %174 = vector.broadcast %cst_64 : f32 to vector<8x32xf32>
    %175 = arith.mulf %174, %173 : vector<8x32xf32>
    %cst_65 = arith.constant 5.000000e-01 : f32
    %176 = vector.broadcast %cst_65 : f32 to vector<8x32xf32>
    %177 = arith.addf %175, %176 : vector<8x32xf32>
    %178 = vector.extract_strided_slice %167 {offsets = [0, 64], sizes = [8, 32], strides = [1, 1]} : vector<8x128xf32> to vector<8x32xf32>
    %179 = vector.extract_strided_slice %167 {offsets = [0, 96], sizes = [8, 32], strides = [1, 1]} : vector<8x128xf32> to vector<8x32xf32>
    %cst_66 = arith.constant 5.000000e-01 : f32
    %180 = vector.broadcast %cst_66 : f32 to vector<8x32xf32>
    %181 = arith.mulf %180, %179 : vector<8x32xf32>
    %cst_67 = arith.constant 5.000000e-01 : f32
    %182 = vector.broadcast %cst_67 : f32 to vector<8x32xf32>
    %183 = arith.addf %181, %182 : vector<8x32xf32>
    %184 = arith.mulf %177, %135 : vector<8x32xf32>
    %185 = arith.mulf %172, %178 : vector<8x32xf32>
    %186 = arith.addf %184, %185 : vector<8x32xf32>
    %187 = math.tanh %186 : vector<8x32xf32>
    %188 = arith.mulf %183, %187 : vector<8x32xf32>
    %c32 = arith.constant 32 : index
    %c0_68 = arith.constant 0 : index
    %189 = vector.load %arg9[%c32, %c0_68] : memref<64x128xf32, #tpu.memory_space<vmem>>, vector<8x128xf32>
    %cst_69 = arith.constant dense<0.000000e+00> : vector<8x128xf32>
    %190 = tpu.matmul %162, %7, %cst_69 {dimension_numbers = #tpu.dot_dimension_numbers<[1], [0], [0], [1], [0, 0, 1, 1], [], []>} : vector<8x32xf32>, vector<32x128xf32>, vector<8x128xf32> -> vector<8x128xf32>
    %191 = arith.addf %189, %190 : vector<8x128xf32>
    %192 = math.tanh %191 : vector<8x128xf32>
    %193 = vector.extract_strided_slice %192 {offsets = [0, 0], sizes = [8, 32], strides = [1, 1]} : vector<8x128xf32> to vector<8x32xf32>
    %cst_70 = arith.constant 5.000000e-01 : f32
    %194 = vector.broadcast %cst_70 : f32 to vector<8x32xf32>
    %195 = arith.mulf %194, %193 : vector<8x32xf32>
    %cst_71 = arith.constant 5.000000e-01 : f32
    %196 = vector.broadcast %cst_71 : f32 to vector<8x32xf32>
    %197 = arith.addf %195, %196 : vector<8x32xf32>
    %198 = vector.extract_strided_slice %192 {offsets = [0, 32], sizes = [8, 32], strides = [1, 1]} : vector<8x128xf32> to vector<8x32xf32>
    %cst_72 = arith.constant 5.000000e-01 : f32
    %199 = vector.broadcast %cst_72 : f32 to vector<8x32xf32>
    %200 = arith.mulf %199, %198 : vector<8x32xf32>
    %cst_73 = arith.constant 5.000000e-01 : f32
    %201 = vector.broadcast %cst_73 : f32 to vector<8x32xf32>
    %202 = arith.addf %200, %201 : vector<8x32xf32>
    %203 = vector.extract_strided_slice %192 {offsets = [0, 64], sizes = [8, 32], strides = [1, 1]} : vector<8x128xf32> to vector<8x32xf32>
    %204 = vector.extract_strided_slice %192 {offsets = [0, 96], sizes = [8, 32], strides = [1, 1]} : vector<8x128xf32> to vector<8x32xf32>
    %cst_74 = arith.constant 5.000000e-01 : f32
    %205 = vector.broadcast %cst_74 : f32 to vector<8x32xf32>
    %206 = arith.mulf %205, %204 : vector<8x32xf32>
    %cst_75 = arith.constant 5.000000e-01 : f32
    %207 = vector.broadcast %cst_75 : f32 to vector<8x32xf32>
    %208 = arith.addf %206, %207 : vector<8x32xf32>
    %209 = arith.mulf %202, %160 : vector<8x32xf32>
    %210 = arith.mulf %197, %203 : vector<8x32xf32>
    %211 = arith.addf %209, %210 : vector<8x32xf32>
    %212 = math.tanh %211 : vector<8x32xf32>
    %213 = arith.mulf %208, %212 : vector<8x32xf32>
    %214 = tpu.concatenate %162, %188 in 1 : vector<8x32xf32>, vector<8x32xf32> -> vector<8x64xf32>
    %cst_76 = arith.constant dense<0.000000e+00> : vector<8x128xf32>
    %215 = tpu.matmul %214, %8, %cst_76 {dimension_numbers = #tpu.dot_dimension_numbers<[1], [0], [0], [1], [0, 0, 1, 1], [], []>} : vector<8x64xf32>, vector<64x128xf32>, vector<8x128xf32> -> vector<8x128xf32>
    %216 = vector.broadcast %9 : vector<1x128xf32> to vector<8x128xf32>
    %217 = arith.addf %215, %216 : vector<8x128xf32>
    %218 = math.tanh %217 : vector<8x128xf32>
    %219 = vector.extract_strided_slice %218 {offsets = [0, 0], sizes = [8, 32], strides = [1, 1]} : vector<8x128xf32> to vector<8x32xf32>
    %cst_77 = arith.constant 5.000000e-01 : f32
    %220 = vector.broadcast %cst_77 : f32 to vector<8x32xf32>
    %221 = arith.mulf %220, %219 : vector<8x32xf32>
    %cst_78 = arith.constant 5.000000e-01 : f32
    %222 = vector.broadcast %cst_78 : f32 to vector<8x32xf32>
    %223 = arith.addf %221, %222 : vector<8x32xf32>
    %224 = vector.extract_strided_slice %218 {offsets = [0, 32], sizes = [8, 32], strides = [1, 1]} : vector<8x128xf32> to vector<8x32xf32>
    %cst_79 = arith.constant 5.000000e-01 : f32
    %225 = vector.broadcast %cst_79 : f32 to vector<8x32xf32>
    %226 = arith.mulf %225, %224 : vector<8x32xf32>
    %cst_80 = arith.constant 5.000000e-01 : f32
    %227 = vector.broadcast %cst_80 : f32 to vector<8x32xf32>
    %228 = arith.addf %226, %227 : vector<8x32xf32>
    %229 = vector.extract_strided_slice %218 {offsets = [0, 64], sizes = [8, 32], strides = [1, 1]} : vector<8x128xf32> to vector<8x32xf32>
    %230 = vector.extract_strided_slice %218 {offsets = [0, 96], sizes = [8, 32], strides = [1, 1]} : vector<8x128xf32> to vector<8x32xf32>
    %cst_81 = arith.constant 5.000000e-01 : f32
    %231 = vector.broadcast %cst_81 : f32 to vector<8x32xf32>
    %232 = arith.mulf %231, %230 : vector<8x32xf32>
    %cst_82 = arith.constant 5.000000e-01 : f32
    %233 = vector.broadcast %cst_82 : f32 to vector<8x32xf32>
    %234 = arith.addf %232, %233 : vector<8x32xf32>
    %235 = arith.mulf %228, %186 : vector<8x32xf32>
    %236 = arith.mulf %223, %229 : vector<8x32xf32>
    %237 = arith.addf %235, %236 : vector<8x32xf32>
    %238 = math.tanh %237 : vector<8x32xf32>
    %239 = arith.mulf %234, %238 : vector<8x32xf32>
    %c40 = arith.constant 40 : index
    %c0_83 = arith.constant 0 : index
    %240 = vector.load %arg9[%c40, %c0_83] : memref<64x128xf32, #tpu.memory_space<vmem>>, vector<8x128xf32>
    %cst_84 = arith.constant dense<0.000000e+00> : vector<8x128xf32>
    %241 = tpu.matmul %213, %7, %cst_84 {dimension_numbers = #tpu.dot_dimension_numbers<[1], [0], [0], [1], [0, 0, 1, 1], [], []>} : vector<8x32xf32>, vector<32x128xf32>, vector<8x128xf32> -> vector<8x128xf32>
    %242 = arith.addf %240, %241 : vector<8x128xf32>
    %243 = math.tanh %242 : vector<8x128xf32>
    %244 = vector.extract_strided_slice %243 {offsets = [0, 0], sizes = [8, 32], strides = [1, 1]} : vector<8x128xf32> to vector<8x32xf32>
    %cst_85 = arith.constant 5.000000e-01 : f32
    %245 = vector.broadcast %cst_85 : f32 to vector<8x32xf32>
    %246 = arith.mulf %245, %244 : vector<8x32xf32>
    %cst_86 = arith.constant 5.000000e-01 : f32
    %247 = vector.broadcast %cst_86 : f32 to vector<8x32xf32>
    %248 = arith.addf %246, %247 : vector<8x32xf32>
    %249 = vector.extract_strided_slice %243 {offsets = [0, 32], sizes = [8, 32], strides = [1, 1]} : vector<8x128xf32> to vector<8x32xf32>
    %cst_87 = arith.constant 5.000000e-01 : f32
    %250 = vector.broadcast %cst_87 : f32 to vector<8x32xf32>
    %251 = arith.mulf %250, %249 : vector<8x32xf32>
    %cst_88 = arith.constant 5.000000e-01 : f32
    %252 = vector.broadcast %cst_88 : f32 to vector<8x32xf32>
    %253 = arith.addf %251, %252 : vector<8x32xf32>
    %254 = vector.extract_strided_slice %243 {offsets = [0, 64], sizes = [8, 32], strides = [1, 1]} : vector<8x128xf32> to vector<8x32xf32>
    %255 = vector.extract_strided_slice %243 {offsets = [0, 96], sizes = [8, 32], strides = [1, 1]} : vector<8x128xf32> to vector<8x32xf32>
    %cst_89 = arith.constant 5.000000e-01 : f32
    %256 = vector.broadcast %cst_89 : f32 to vector<8x32xf32>
    %257 = arith.mulf %256, %255 : vector<8x32xf32>
    %cst_90 = arith.constant 5.000000e-01 : f32
    %258 = vector.broadcast %cst_90 : f32 to vector<8x32xf32>
    %259 = arith.addf %257, %258 : vector<8x32xf32>
    %260 = arith.mulf %253, %211 : vector<8x32xf32>
    %261 = arith.mulf %248, %254 : vector<8x32xf32>
    %262 = arith.addf %260, %261 : vector<8x32xf32>
    %263 = math.tanh %262 : vector<8x32xf32>
    %264 = arith.mulf %259, %263 : vector<8x32xf32>
    %265 = tpu.concatenate %213, %239 in 1 : vector<8x32xf32>, vector<8x32xf32> -> vector<8x64xf32>
    %cst_91 = arith.constant dense<0.000000e+00> : vector<8x128xf32>
    %266 = tpu.matmul %265, %8, %cst_91 {dimension_numbers = #tpu.dot_dimension_numbers<[1], [0], [0], [1], [0, 0, 1, 1], [], []>} : vector<8x64xf32>, vector<64x128xf32>, vector<8x128xf32> -> vector<8x128xf32>
    %267 = vector.broadcast %9 : vector<1x128xf32> to vector<8x128xf32>
    %268 = arith.addf %266, %267 : vector<8x128xf32>
    %269 = math.tanh %268 : vector<8x128xf32>
    %270 = vector.extract_strided_slice %269 {offsets = [0, 0], sizes = [8, 32], strides = [1, 1]} : vector<8x128xf32> to vector<8x32xf32>
    %cst_92 = arith.constant 5.000000e-01 : f32
    %271 = vector.broadcast %cst_92 : f32 to vector<8x32xf32>
    %272 = arith.mulf %271, %270 : vector<8x32xf32>
    %cst_93 = arith.constant 5.000000e-01 : f32
    %273 = vector.broadcast %cst_93 : f32 to vector<8x32xf32>
    %274 = arith.addf %272, %273 : vector<8x32xf32>
    %275 = vector.extract_strided_slice %269 {offsets = [0, 32], sizes = [8, 32], strides = [1, 1]} : vector<8x128xf32> to vector<8x32xf32>
    %cst_94 = arith.constant 5.000000e-01 : f32
    %276 = vector.broadcast %cst_94 : f32 to vector<8x32xf32>
    %277 = arith.mulf %276, %275 : vector<8x32xf32>
    %cst_95 = arith.constant 5.000000e-01 : f32
    %278 = vector.broadcast %cst_95 : f32 to vector<8x32xf32>
    %279 = arith.addf %277, %278 : vector<8x32xf32>
    %280 = vector.extract_strided_slice %269 {offsets = [0, 64], sizes = [8, 32], strides = [1, 1]} : vector<8x128xf32> to vector<8x32xf32>
    %281 = vector.extract_strided_slice %269 {offsets = [0, 96], sizes = [8, 32], strides = [1, 1]} : vector<8x128xf32> to vector<8x32xf32>
    %cst_96 = arith.constant 5.000000e-01 : f32
    %282 = vector.broadcast %cst_96 : f32 to vector<8x32xf32>
    %283 = arith.mulf %282, %281 : vector<8x32xf32>
    %cst_97 = arith.constant 5.000000e-01 : f32
    %284 = vector.broadcast %cst_97 : f32 to vector<8x32xf32>
    %285 = arith.addf %283, %284 : vector<8x32xf32>
    %286 = arith.mulf %279, %237 : vector<8x32xf32>
    %287 = arith.mulf %274, %280 : vector<8x32xf32>
    %288 = arith.addf %286, %287 : vector<8x32xf32>
    %289 = math.tanh %288 : vector<8x32xf32>
    %290 = arith.mulf %285, %289 : vector<8x32xf32>
    %c48 = arith.constant 48 : index
    %c0_98 = arith.constant 0 : index
    %291 = vector.load %arg9[%c48, %c0_98] : memref<64x128xf32, #tpu.memory_space<vmem>>, vector<8x128xf32>
    %cst_99 = arith.constant dense<0.000000e+00> : vector<8x128xf32>
    %292 = tpu.matmul %264, %7, %cst_99 {dimension_numbers = #tpu.dot_dimension_numbers<[1], [0], [0], [1], [0, 0, 1, 1], [], []>} : vector<8x32xf32>, vector<32x128xf32>, vector<8x128xf32> -> vector<8x128xf32>
    %293 = arith.addf %291, %292 : vector<8x128xf32>
    %294 = math.tanh %293 : vector<8x128xf32>
    %295 = vector.extract_strided_slice %294 {offsets = [0, 0], sizes = [8, 32], strides = [1, 1]} : vector<8x128xf32> to vector<8x32xf32>
    %cst_100 = arith.constant 5.000000e-01 : f32
    %296 = vector.broadcast %cst_100 : f32 to vector<8x32xf32>
    %297 = arith.mulf %296, %295 : vector<8x32xf32>
    %cst_101 = arith.constant 5.000000e-01 : f32
    %298 = vector.broadcast %cst_101 : f32 to vector<8x32xf32>
    %299 = arith.addf %297, %298 : vector<8x32xf32>
    %300 = vector.extract_strided_slice %294 {offsets = [0, 32], sizes = [8, 32], strides = [1, 1]} : vector<8x128xf32> to vector<8x32xf32>
    %cst_102 = arith.constant 5.000000e-01 : f32
    %301 = vector.broadcast %cst_102 : f32 to vector<8x32xf32>
    %302 = arith.mulf %301, %300 : vector<8x32xf32>
    %cst_103 = arith.constant 5.000000e-01 : f32
    %303 = vector.broadcast %cst_103 : f32 to vector<8x32xf32>
    %304 = arith.addf %302, %303 : vector<8x32xf32>
    %305 = vector.extract_strided_slice %294 {offsets = [0, 64], sizes = [8, 32], strides = [1, 1]} : vector<8x128xf32> to vector<8x32xf32>
    %306 = vector.extract_strided_slice %294 {offsets = [0, 96], sizes = [8, 32], strides = [1, 1]} : vector<8x128xf32> to vector<8x32xf32>
    %cst_104 = arith.constant 5.000000e-01 : f32
    %307 = vector.broadcast %cst_104 : f32 to vector<8x32xf32>
    %308 = arith.mulf %307, %306 : vector<8x32xf32>
    %cst_105 = arith.constant 5.000000e-01 : f32
    %309 = vector.broadcast %cst_105 : f32 to vector<8x32xf32>
    %310 = arith.addf %308, %309 : vector<8x32xf32>
    %311 = arith.mulf %304, %262 : vector<8x32xf32>
    %312 = arith.mulf %299, %305 : vector<8x32xf32>
    %313 = arith.addf %311, %312 : vector<8x32xf32>
    %314 = math.tanh %313 : vector<8x32xf32>
    %315 = arith.mulf %310, %314 : vector<8x32xf32>
    %316 = tpu.concatenate %264, %290 in 1 : vector<8x32xf32>, vector<8x32xf32> -> vector<8x64xf32>
    %cst_106 = arith.constant dense<0.000000e+00> : vector<8x128xf32>
    %317 = tpu.matmul %316, %8, %cst_106 {dimension_numbers = #tpu.dot_dimension_numbers<[1], [0], [0], [1], [0, 0, 1, 1], [], []>} : vector<8x64xf32>, vector<64x128xf32>, vector<8x128xf32> -> vector<8x128xf32>
    %318 = vector.broadcast %9 : vector<1x128xf32> to vector<8x128xf32>
    %319 = arith.addf %317, %318 : vector<8x128xf32>
    %320 = math.tanh %319 : vector<8x128xf32>
    %321 = vector.extract_strided_slice %320 {offsets = [0, 0], sizes = [8, 32], strides = [1, 1]} : vector<8x128xf32> to vector<8x32xf32>
    %cst_107 = arith.constant 5.000000e-01 : f32
    %322 = vector.broadcast %cst_107 : f32 to vector<8x32xf32>
    %323 = arith.mulf %322, %321 : vector<8x32xf32>
    %cst_108 = arith.constant 5.000000e-01 : f32
    %324 = vector.broadcast %cst_108 : f32 to vector<8x32xf32>
    %325 = arith.addf %323, %324 : vector<8x32xf32>
    %326 = vector.extract_strided_slice %320 {offsets = [0, 32], sizes = [8, 32], strides = [1, 1]} : vector<8x128xf32> to vector<8x32xf32>
    %cst_109 = arith.constant 5.000000e-01 : f32
    %327 = vector.broadcast %cst_109 : f32 to vector<8x32xf32>
    %328 = arith.mulf %327, %326 : vector<8x32xf32>
    %cst_110 = arith.constant 5.000000e-01 : f32
    %329 = vector.broadcast %cst_110 : f32 to vector<8x32xf32>
    %330 = arith.addf %328, %329 : vector<8x32xf32>
    %331 = vector.extract_strided_slice %320 {offsets = [0, 64], sizes = [8, 32], strides = [1, 1]} : vector<8x128xf32> to vector<8x32xf32>
    %332 = vector.extract_strided_slice %320 {offsets = [0, 96], sizes = [8, 32], strides = [1, 1]} : vector<8x128xf32> to vector<8x32xf32>
    %cst_111 = arith.constant 5.000000e-01 : f32
    %333 = vector.broadcast %cst_111 : f32 to vector<8x32xf32>
    %334 = arith.mulf %333, %332 : vector<8x32xf32>
    %cst_112 = arith.constant 5.000000e-01 : f32
    %335 = vector.broadcast %cst_112 : f32 to vector<8x32xf32>
    %336 = arith.addf %334, %335 : vector<8x32xf32>
    %337 = arith.mulf %330, %288 : vector<8x32xf32>
    %338 = arith.mulf %325, %331 : vector<8x32xf32>
    %339 = arith.addf %337, %338 : vector<8x32xf32>
    %340 = math.tanh %339 : vector<8x32xf32>
    %341 = arith.mulf %336, %340 : vector<8x32xf32>
    %c56 = arith.constant 56 : index
    %c0_113 = arith.constant 0 : index
    %342 = vector.load %arg9[%c56, %c0_113] : memref<64x128xf32, #tpu.memory_space<vmem>>, vector<8x128xf32>
    %cst_114 = arith.constant dense<0.000000e+00> : vector<8x128xf32>
    %343 = tpu.matmul %315, %7, %cst_114 {dimension_numbers = #tpu.dot_dimension_numbers<[1], [0], [0], [1], [0, 0, 1, 1], [], []>} : vector<8x32xf32>, vector<32x128xf32>, vector<8x128xf32> -> vector<8x128xf32>
    %344 = arith.addf %342, %343 : vector<8x128xf32>
    %345 = math.tanh %344 : vector<8x128xf32>
    %346 = vector.extract_strided_slice %345 {offsets = [0, 0], sizes = [8, 32], strides = [1, 1]} : vector<8x128xf32> to vector<8x32xf32>
    %cst_115 = arith.constant 5.000000e-01 : f32
    %347 = vector.broadcast %cst_115 : f32 to vector<8x32xf32>
    %348 = arith.mulf %347, %346 : vector<8x32xf32>
    %cst_116 = arith.constant 5.000000e-01 : f32
    %349 = vector.broadcast %cst_116 : f32 to vector<8x32xf32>
    %350 = arith.addf %348, %349 : vector<8x32xf32>
    %351 = vector.extract_strided_slice %345 {offsets = [0, 32], sizes = [8, 32], strides = [1, 1]} : vector<8x128xf32> to vector<8x32xf32>
    %cst_117 = arith.constant 5.000000e-01 : f32
    %352 = vector.broadcast %cst_117 : f32 to vector<8x32xf32>
    %353 = arith.mulf %352, %351 : vector<8x32xf32>
    %cst_118 = arith.constant 5.000000e-01 : f32
    %354 = vector.broadcast %cst_118 : f32 to vector<8x32xf32>
    %355 = arith.addf %353, %354 : vector<8x32xf32>
    %356 = vector.extract_strided_slice %345 {offsets = [0, 64], sizes = [8, 32], strides = [1, 1]} : vector<8x128xf32> to vector<8x32xf32>
    %357 = vector.extract_strided_slice %345 {offsets = [0, 96], sizes = [8, 32], strides = [1, 1]} : vector<8x128xf32> to vector<8x32xf32>
    %cst_119 = arith.constant 5.000000e-01 : f32
    %358 = vector.broadcast %cst_119 : f32 to vector<8x32xf32>
    %359 = arith.mulf %358, %357 : vector<8x32xf32>
    %cst_120 = arith.constant 5.000000e-01 : f32
    %360 = vector.broadcast %cst_120 : f32 to vector<8x32xf32>
    %361 = arith.addf %359, %360 : vector<8x32xf32>
    %362 = arith.mulf %355, %313 : vector<8x32xf32>
    %363 = arith.mulf %350, %356 : vector<8x32xf32>
    %364 = arith.addf %362, %363 : vector<8x32xf32>
    %365 = math.tanh %364 : vector<8x32xf32>
    %366 = arith.mulf %361, %365 : vector<8x32xf32>
    %367 = tpu.concatenate %315, %341 in 1 : vector<8x32xf32>, vector<8x32xf32> -> vector<8x64xf32>
    %cst_121 = arith.constant dense<0.000000e+00> : vector<8x128xf32>
    %368 = tpu.matmul %367, %8, %cst_121 {dimension_numbers = #tpu.dot_dimension_numbers<[1], [0], [0], [1], [0, 0, 1, 1], [], []>} : vector<8x64xf32>, vector<64x128xf32>, vector<8x128xf32> -> vector<8x128xf32>
    %369 = vector.broadcast %9 : vector<1x128xf32> to vector<8x128xf32>
    %370 = arith.addf %368, %369 : vector<8x128xf32>
    %371 = math.tanh %370 : vector<8x128xf32>
    %372 = vector.extract_strided_slice %371 {offsets = [0, 0], sizes = [8, 32], strides = [1, 1]} : vector<8x128xf32> to vector<8x32xf32>
    %cst_122 = arith.constant 5.000000e-01 : f32
    %373 = vector.broadcast %cst_122 : f32 to vector<8x32xf32>
    %374 = arith.mulf %373, %372 : vector<8x32xf32>
    %cst_123 = arith.constant 5.000000e-01 : f32
    %375 = vector.broadcast %cst_123 : f32 to vector<8x32xf32>
    %376 = arith.addf %374, %375 : vector<8x32xf32>
    %377 = vector.extract_strided_slice %371 {offsets = [0, 32], sizes = [8, 32], strides = [1, 1]} : vector<8x128xf32> to vector<8x32xf32>
    %cst_124 = arith.constant 5.000000e-01 : f32
    %378 = vector.broadcast %cst_124 : f32 to vector<8x32xf32>
    %379 = arith.mulf %378, %377 : vector<8x32xf32>
    %cst_125 = arith.constant 5.000000e-01 : f32
    %380 = vector.broadcast %cst_125 : f32 to vector<8x32xf32>
    %381 = arith.addf %379, %380 : vector<8x32xf32>
    %382 = vector.extract_strided_slice %371 {offsets = [0, 64], sizes = [8, 32], strides = [1, 1]} : vector<8x128xf32> to vector<8x32xf32>
    %383 = vector.extract_strided_slice %371 {offsets = [0, 96], sizes = [8, 32], strides = [1, 1]} : vector<8x128xf32> to vector<8x32xf32>
    %cst_126 = arith.constant 5.000000e-01 : f32
    %384 = vector.broadcast %cst_126 : f32 to vector<8x32xf32>
    %385 = arith.mulf %384, %383 : vector<8x32xf32>
    %cst_127 = arith.constant 5.000000e-01 : f32
    %386 = vector.broadcast %cst_127 : f32 to vector<8x32xf32>
    %387 = arith.addf %385, %386 : vector<8x32xf32>
    %388 = arith.mulf %381, %339 : vector<8x32xf32>
    %389 = arith.mulf %376, %382 : vector<8x32xf32>
    %390 = arith.addf %388, %389 : vector<8x32xf32>
    %391 = math.tanh %390 : vector<8x32xf32>
    %392 = arith.mulf %387, %391 : vector<8x32xf32>
    %393 = tpu.concatenate %366, %392 in 1 : vector<8x32xf32>, vector<8x32xf32> -> vector<8x64xf32>
    %cst_128 = arith.constant dense<0.000000e+00> : vector<8x128xf32>
    %394 = tpu.matmul %393, %8, %cst_128 {dimension_numbers = #tpu.dot_dimension_numbers<[1], [0], [0], [1], [0, 0, 1, 1], [], []>} : vector<8x64xf32>, vector<64x128xf32>, vector<8x128xf32> -> vector<8x128xf32>
    %395 = vector.broadcast %9 : vector<1x128xf32> to vector<8x128xf32>
    %396 = arith.addf %394, %395 : vector<8x128xf32>
    %397 = math.tanh %396 : vector<8x128xf32>
    %398 = vector.extract_strided_slice %397 {offsets = [0, 0], sizes = [8, 32], strides = [1, 1]} : vector<8x128xf32> to vector<8x32xf32>
    %cst_129 = arith.constant 5.000000e-01 : f32
    %399 = vector.broadcast %cst_129 : f32 to vector<8x32xf32>
    %400 = arith.mulf %399, %398 : vector<8x32xf32>
    %cst_130 = arith.constant 5.000000e-01 : f32
    %401 = vector.broadcast %cst_130 : f32 to vector<8x32xf32>
    %402 = arith.addf %400, %401 : vector<8x32xf32>
    %403 = vector.extract_strided_slice %397 {offsets = [0, 32], sizes = [8, 32], strides = [1, 1]} : vector<8x128xf32> to vector<8x32xf32>
    %cst_131 = arith.constant 5.000000e-01 : f32
    %404 = vector.broadcast %cst_131 : f32 to vector<8x32xf32>
    %405 = arith.mulf %404, %403 : vector<8x32xf32>
    %cst_132 = arith.constant 5.000000e-01 : f32
    %406 = vector.broadcast %cst_132 : f32 to vector<8x32xf32>
    %407 = arith.addf %405, %406 : vector<8x32xf32>
    %408 = vector.extract_strided_slice %397 {offsets = [0, 64], sizes = [8, 32], strides = [1, 1]} : vector<8x128xf32> to vector<8x32xf32>
    %409 = vector.extract_strided_slice %397 {offsets = [0, 96], sizes = [8, 32], strides = [1, 1]} : vector<8x128xf32> to vector<8x32xf32>
    %cst_133 = arith.constant 5.000000e-01 : f32
    %410 = vector.broadcast %cst_133 : f32 to vector<8x32xf32>
    %411 = arith.mulf %410, %409 : vector<8x32xf32>
    %cst_134 = arith.constant 5.000000e-01 : f32
    %412 = vector.broadcast %cst_134 : f32 to vector<8x32xf32>
    %413 = arith.addf %411, %412 : vector<8x32xf32>
    %414 = arith.mulf %407, %390 : vector<8x32xf32>
    %415 = arith.mulf %402, %408 : vector<8x32xf32>
    %416 = arith.addf %414, %415 : vector<8x32xf32>
    %417 = math.tanh %416 : vector<8x32xf32>
    %418 = arith.mulf %413, %417 : vector<8x32xf32>
    %c0_135 = arith.constant 0 : index
    %c0_136 = arith.constant 0 : index
    %419 = vector.load %arg6[%c0_135, %c0_136] : memref<32x128xf32, #tpu.memory_space<vmem>>, vector<32x128xf32>
    %cst_137 = arith.constant dense<0.000000e+00> : vector<8x128xf32>
    %420 = tpu.matmul %418, %419, %cst_137 {dimension_numbers = #tpu.dot_dimension_numbers<[1], [0], [0], [1], [0, 0, 1, 1], [], []>} : vector<8x32xf32>, vector<32x128xf32>, vector<8x128xf32> -> vector<8x128xf32>
    %c0_138 = arith.constant 0 : index
    %c0_139 = arith.constant 0 : index
    %421 = vector.load %arg7[%c0_138, %c0_139] : memref<1x128xf32, #tpu.memory_space<vmem>>, vector<1x128xf32>
    %422 = vector.broadcast %421 : vector<1x128xf32> to vector<8x128xf32>
    %423 = arith.addf %420, %422 : vector<8x128xf32>
    %c0_140 = arith.constant 0 : index
    %c0_141 = arith.constant 0 : index
    %424 = vector.load %arg8[%c0_140, %c0_141] : memref<8x128xf32, #tpu.memory_space<vmem>>, vector<8x128xf32>
    tpu.vector_store %arg8[%c0_140, %c0_141], %423 {strides = array<i32>} : memref<8x128xf32, #tpu.memory_space<vmem>>, vector<8x128xf32>,
    return
  }
}

</mosaic_0001>

<bundles_post_ra>
// kernel: lstm_model_forward.1
= control target key start
LH: loop header
LB: loop body
LE: loop exit
PB: predicated region body
PF: predicated region fallthrough
CT: control target
= control target key end

     0   :  { %vm43_vm0 = vcmask 130048   ;;  %v1032_v7 = vmov 0.0   ;;  %s1033_s19 = smov 64   ;;  %s1034_s20 = smov 32   ;;  %vm131_vm1 = vcmask 261120   ;;  %vm228_vm2 = vcmask 523264   ;;  %s1410_s2 = inlined_call_operand.vmem [shape: f32[32,128], index: 2, kind: input, shape index: {}]   ;;  %s1411_s1 = inlined_call_operand.vmem [shape: f32[16,128], index: 1, kind: input, shape index: {}]   ;;  %s1412_s0 = inlined_call_operand.vmem [shape: f32[64,16], index: 0, kind: input, shape index: {}]   ;;  %s1413_s3 = inlined_call_operand.vmem [shape: f32[1,128], index: 3, kind: input, shape index: {}]   ;;  %s1414_s4 = inlined_call_operand.vmem [shape: f32[64,128], index: 4, kind: input, shape index: {}]   ;;  %s1415_s5 = inlined_call_operand.vmem [shape: f32[1,128], index: 5, kind: input, shape index: {}]   ;;  %s1416_s6 = inlined_call_operand.vmem [shape: f32[32,128], index: 6, kind: input, shape index: {}]   ;;  %s1417_s7 = inlined_call_operand.vmem [shape: f32[1,128], index: 7, kind: input, shape index: {}]   ;;  %s1418_s8 = inlined_call_operand.vmem [shape: f32[8,128], index: 8, kind: output, shape index: {}]  }
   0x1   :  { %v1083_v0 = vld [vmem:[%s1410_s2 + $0x18] sm:$0xff]  ;;  %v38_v1 = vld [vmem:[%s1411_s1 + $0x8] sm:$0xff]  ;;  %v1091_v2 = vld [vmem:[%s1410_s2 + $0x10] sm:$0xff] }
   0x2   :  { %147 = vmatpush.msra.mxu1 %v1083_v0  ;;  %82 = vmatpush.msra.mxu0 %v38_v1  ;;  %v37_v3 = vld [vmem:[%s1411_s1] sm:$0xff]  ;;  %v1103_v5 = vld [vmem:[%s1410_s2 + $0x8] sm:$0xff]  ;;  %v1141_v22 = vld [vmem:[%s1414_s4 + $0x38] sm:$0xff] }
   0x3   :  { %v29_v4 = vld [vmem:[%s1412_s0] sm:$0xff]  ;;  %194 = vmatpush.msra.mxu2 %v1083_v0  ;;  %v1146_v23 = vld [vmem:[%s1414_s4 + $0x30] sm:$0xff]  ;;  %240 = vmatpush.msra.mxu3 %v1141_v22  ;;  %v1153_v24 = vld [vmem:[%s1414_s4 + $0x28] sm:$0xff] }
   0x4   :  { %148 = vmatpush.msra.mxu1 %v1091_v2  ;;  %83 = vmatpush.msra.mxu0 %v37_v3  ;;  %v1111_v6 = vld [vmem:[%s1410_s2] sm:$0xff]  ;;  %v1169_v26 = vld [vmem:[%s1414_s4 + $0x18] sm:$0xff]  ;;  %v1177_v27 = vld [vmem:[%s1414_s4 + $0x10] sm:$0xff] }
   0x5   :  { %938 = vmatmul.msk.f32.vlgmr.msra.gmra.mxu0 %vm43_vm0, %v29_v4  ;;  %195 = vmatpush.msra.mxu2 %v1091_v2  ;;  %v1129_v8 = vld [vmem:[%s1413_s3] ss:$0 sm:$0xff]  ;;  %v1185_v28 = vld [vmem:[%s1414_s4 + $0x8] sm:$0xff]  ;;  %v31_v62 = vld [vmem:[%s1412_s0 + $0x10] sm:$0xff] }
   0x6   :  { %149 = vmatpush.msra.mxu1 %v1103_v5  ;;  %868 = vmatpush.msrb.mxu0 %v1141_v22  ;;  %v1161_v25 = vld [vmem:[%s1414_s4 + $0x20] sm:$0xff]  ;;  %v30_v32 = vld [vmem:[%s1412_s0 + $0x8] sm:$0xff] }
   0x7   :  { %196 = vmatpush.msra.mxu2 %v1103_v5  ;;  %241 = vmatpush.msra.mxu3 %v1146_v23  ;;  %v1198_v31 = vld [vmem:[%s1414_s4] sm:$0xff] }
   0x8   :  { %150 = vmatpush.msra.mxu1 %v1111_v6  ;;  %869 = vmatpush.msrb.mxu0 %v1146_v23  ;;  %v1238_v39 = vld [vmem:[%s1415_s5] ss:$0 sm:$0xff] }
   0x9   :  { %151 = vmatmul.f32.vlgmr.msra.gmra.mxu1 %v1032_v7  ;;  %197 = vmatpush.msra.mxu2 %v1111_v6 }
   0xa   :  { %290 = vmatpush.msrb.mxu1 %v1083_v0  ;;  %242 = vmatpush.msra.mxu3 %v1153_v24 }
   0xb   :  { %336 = vmatpush.msrb.mxu2 %v1141_v22  ;;  %870 = vmatpush.msrb.mxu0 %v1153_v24 }
   0xc   :  { %291 = vmatpush.msrb.mxu1 %v1091_v2  ;;  %243 = vmatpush.msra.mxu3 %v1161_v25 }
   0xd   :  { %337 = vmatpush.msrb.mxu2 %v1146_v23  ;;  %871 = vmatpush.msrb.mxu0 %v1161_v25 }
   0xe   :  { %292 = vmatpush.msrb.mxu1 %v1103_v5  ;;  %244 = vmatpush.msra.mxu3 %v1169_v26 }
   0xf   :  { %338 = vmatpush.msrb.mxu2 %v1153_v24  ;;  %872 = vmatpush.msrb.mxu0 %v1169_v26 }
  0x10   :  { %293 = vmatpush.msrb.mxu1 %v1111_v6  ;;  %245 = vmatpush.msra.mxu3 %v1177_v27 }
  0x11   :  { %339 = vmatpush.msrb.mxu2 %v1161_v25  ;;  %873 = vmatpush.msrb.mxu0 %v1177_v27 }
  0x12   :  { %386 = vmatpush.msra.mxu1 %v1083_v0  ;;  %246 = vmatpush.msra.mxu3 %v1185_v28 }
  0x13   :  { %340 = vmatpush.msrb.mxu2 %v1169_v26  ;;  %874 = vmatpush.msrb.mxu0 %v1185_v28 }
  0x14   :  { %387 = vmatpush.msra.mxu1 %v1091_v2  ;;  %247 = vmatpush.msra.mxu3 %v1198_v31 }
  0x15   :  { %341 = vmatpush.msrb.mxu2 %v1177_v27  ;;  %875 = vmatpush.msrb.mxu0 %v1198_v31 }
  0x16   :  { %388 = vmatpush.msra.mxu1 %v1103_v5  ;;  %432 = vmatpush.msrb.mxu3 %v1141_v22 }
  0x17   :  { %342 = vmatpush.msrb.mxu2 %v1185_v28  ;;  %939 = vmatmul.msk.f32.gmra.mxu0 %vm43_vm0, %v30_v32 }
  0x18   :  { %389 = vmatpush.msra.mxu1 %v1111_v6  ;;  %433 = vmatpush.msrb.mxu3 %v1146_v23 }
  0x19   :  { %343 = vmatpush.msrb.mxu2 %v1198_v31 }
  0x1a   :  { %434 = vmatpush.msrb.mxu3 %v1153_v24 }
  0x1c   :  { %435 = vmatpush.msrb.mxu3 %v1161_v25 }
  0x1e   :  { %436 = vmatpush.msrb.mxu3 %v1169_v26 }
  0x1f   :  { %940 = vmatmul.msk.f32.gmra.mxu0 %vm43_vm0, %v31_v62 }
  0x20   :  { %437 = vmatpush.msrb.mxu3 %v1177_v27 }
  0x22   :  { %438 = vmatpush.msrb.mxu3 %v1185_v28 }
  0x24   :  { %439 = vmatpush.msrb.mxu3 %v1198_v31 }
  0x82   :  { %v85_v9 = vpop.f32.mrf.mxu0 }
  0x83   :  { %v86_v10 = vadd.f32 %v1129_v8, %v85_v9 }
  0x86   :  { %v152_v11 = vpop.f32.mrf.mxu1 }
  0x87   :  { %v155_v12 = vadd.f32 %v152_v11, %v86_v10 }
  0x89   :  { %968 = vtanh.f32 %v155_v12 }
  0x8f   :  { %v969_v13 = vpop.eup %968 }
  0x90   :  { %161 = vrot.lane.b32.xlu0 %v969_v13, %s1033_s19  ;;  %v157_v14 = vmul.f32 0.5, %v969_v13 }
  0x92   :  { %v158_v15 = vadd.f32 0.5, %v157_v14 }
  0x94   :  { %v159_v18 = vmul.f32 0.0, %v158_v15  ;;  %v88_v35 = vpop.f32.mrf.mxu0 }
  0x95   :  { %v89_v36 = vadd.f32 %v1129_v8, %v88_v35 }
  0x9c   :  { %v91_v9 = vpop.f32.mrf.mxu0 }
  0x9d   :  { %v92_v10 = vadd.f32 %v1129_v8, %v91_v9 }
 0x102   :  { %v162_v16 = vpop.permute.xlu0 %161 }
 0x103   :  { %v164_v17 = vmul.f32 %v162_v16, %v158_v15 }
 0x105   :  { %166 = vrot.lane.b32.xlu0 %v164_v17, %s1034_s20 }
 0x177   :  { %v167_v19 = vpop.permute.xlu0 %166 }
 0x178   :  { %v1134_v20 = vadd.f32 %v167_v19, %v159_v18 }
 0x17a   :  { %970 = vtanh.f32 %v1134_v20 }
 0x180   :  { %v971_v21 = vpop.eup %970 }
 0x181   :  { %172 = vrot.lane.b32.xlu1 %v971_v21, %s1033_s19 }
 0x1f3   :  { %v173_v29 = vpop.permute.xlu1 %172 }
 0x1f4   :  { %v175_v30 = vmul.f32 %v173_v29, %v158_v15 }
 0x1f6   :  { %178 = vrot.lane.b32.xlu1 %v175_v30, %s1034_s20 }
 0x268   :  { %v179_v33 = vpop.permute.xlu1 %178 }
 0x269   :  { %946 = vmatmul.msk.f32.vlgmr.msra.gmra.mxu2 %vm131_vm1, %v179_v33  ;;  %v224_v34 = vsel %vm131_vm1, %v179_v33, 0.0 }
 0x26a   :  { %947 = vmatmul.msk.f32.vlgmr.msra.gmra.mxu3 %vm228_vm2, %v224_v34  ;;  %528 = vmatpush.msra.mxu2 %v1141_v22 }
 0x26b   :  { %624 = vmatpush.msra.mxu3 %v1141_v22 }
 0x26c   :  { %529 = vmatpush.msra.mxu2 %v1146_v23 }
 0x26d   :  { %625 = vmatpush.msra.mxu3 %v1146_v23 }
 0x26e   :  { %530 = vmatpush.msra.mxu2 %v1153_v24 }
 0x26f   :  { %626 = vmatpush.msra.mxu3 %v1153_v24 }
 0x270   :  { %531 = vmatpush.msra.mxu2 %v1161_v25 }
 0x271   :  { %627 = vmatpush.msra.mxu3 %v1161_v25 }
 0x272   :  { %532 = vmatpush.msra.mxu2 %v1169_v26 }
 0x273   :  { %628 = vmatpush.msra.mxu3 %v1169_v26 }
 0x274   :  { %533 = vmatpush.msra.mxu2 %v1177_v27 }
 0x275   :  { %629 = vmatpush.msra.mxu3 %v1177_v27 }
 0x276   :  { %534 = vmatpush.msra.mxu2 %v1185_v28 }
 0x277   :  { %630 = vmatpush.msra.mxu3 %v1185_v28 }
 0x278   :  { %535 = vmatpush.msra.mxu2 %v1198_v31 }
 0x279   :  { %631 = vmatpush.msra.mxu3 %v1198_v31 }
 0x2ec   :  { %v199_v37 = vpop.f32.mrf.mxu2 }
 0x2ed   :  { %v202_v38 = vadd.f32 %v199_v37, %v89_v36  ;;  %v249_v40 = vpop.f32.mrf.mxu3 }
 0x2ee   :  { %v250_v41 = vadd.f32 %v1238_v39, %v249_v40 }
 0x2ef   :  { %972 = vtanh.f32 %v202_v38 }
 0x2f0   :  { %974 = vtanh.f32 %v250_v41 }
 0x2f5   :  { %v973_v42 = vpop.eup %972 }
 0x2f6   :  { %208 = vrot.lane.b32.xlu2 %v973_v42, %s1033_s19  ;;  %v975_v43 = vpop.eup %974  ;;  %v204_v44 = vmul.f32 0.5, %v973_v42  ;;  %v32_v42 = vld [vmem:[%s1412_s0 + $0x18] sm:$0xff] }
 0x2f7   :  { %v253_v48 = vmul.f32 0.5, %v975_v43  ;;  %941 = vmatmul.msk.f32.gmra.mxu0 %vm43_vm0, %v32_v42 }
 0x2f8   :  { %v205_v45 = vadd.f32 0.5, %v204_v44 }
 0x2f9   :  { %v254_v49 = vadd.f32 0.5, %v253_v48 }
 0x2fa   :  { %v206_v52 = vmul.f32 %v205_v45, %v1134_v20 }
 0x2fb   :  { %v255_v55 = vmul.f32 0.0, %v254_v49 }
 0x2fe   :  { %257 = vrot.lane.b32.xlu2 %v975_v43, %s1033_s19 }
 0x350   :  { %v209_v46 = vpop.permute.xlu2 %208 }
 0x351   :  { %v211_v47 = vmul.f32 %v209_v46, %v205_v45 }
 0x353   :  { %213 = vrot.lane.b32.xlu0 %v211_v47, %s1034_s20 }
 0x358   :  { %v258_v50 = vpop.permute.xlu2 %257 }
 0x359   :  { %v260_v51 = vmul.f32 %v258_v50, %v254_v49 }
 0x35b   :  { %262 = vrot.lane.b32.xlu1 %v260_v51, %s1034_s20 }
 0x374   :  { %v94_v50 = vpop.f32.mrf.mxu0 }
 0x375   :  { %v95_v51 = vadd.f32 %v1129_v8, %v94_v50  ;;  %v34_v50 = vld [vmem:[%s1412_s0 + $0x28] sm:$0xff] }
 0x3c5   :  { %v214_v53 = vpop.permute.xlu0 %213 }
 0x3c6   :  { %v216_v54 = vadd.f32 %v214_v53, %v206_v52 }
 0x3c8   :  { %976 = vtanh.f32 %v216_v54 }
 0x3cd   :  { %v263_v56 = vpop.permute.xlu1 %262 }
 0x3ce   :  { %v977_v57 = vpop.eup %976  ;;  %v265_v58 = vadd.f32 %v263_v56, %v255_v55 }
 0x3cf   :  { %219 = vrot.lane.b32.xlu2 %v977_v57, %s1033_s19 }
 0x3d0   :  { %978 = vtanh.f32 %v265_v58 }
 0x3d6   :  { %v979_v59 = vpop.eup %978 }
 0x3d7   :  { %268 = vrot.lane.b32.xlu0 %v979_v59, %s1033_s19 }
 0x429   :  { %v220_v60 = vpop.permute.xlu2 %219 }
 0x42a   :  { %v222_v61 = vmul.f32 %v220_v60, %v205_v45 }
 0x42c   :  { %274 = vrot.lane.b32.xlu1 %v222_v61, %s1034_s20 }
 0x449   :  { %v269_v63 = vpop.permute.xlu0 %268 }
 0x44a   :  { %v271_v1 = vmul.f32 %v269_v63, %v254_v49 }
 0x44c   :  { %321 = vrot.lane.b32.xlu2 %v271_v1, %s1033_s19 }
 0x49e   :  { %v275_v3 = vpop.permute.xlu1 %274 }
 0x49f   :  { %948 = vmatmul.msk.f32.vlgmr.msrb.gmra.mxu1 %vm131_vm1, %v275_v3 }
 0x4a0   :  { %482 = vmatpush.msrb.mxu1 %v1083_v0 }
 0x4a2   :  { %483 = vmatpush.msrb.mxu1 %v1091_v2 }
 0x4a4   :  { %484 = vmatpush.msrb.mxu1 %v1103_v5 }
 0x4a6   :  { %v322_v4 = vpop.permute.xlu2 %321  ;;  %485 = vmatpush.msrb.mxu1 %v1111_v6 }
 0x4a7   :  { %v324_v7 = vsel %vm131_vm1, %v275_v3, %v322_v4  ;;  %v33_v4 = vld [vmem:[%s1412_s0 + $0x20] sm:$0xff] }
 0x4a8   :  { %949 = vmatmul.msk.f32.vlgmr.msrb.gmra.mxu2 %vm228_vm2, %v324_v7  ;;  %942 = vmatmul.msk.f32.gmra.mxu0 %vm43_vm0, %v33_v4 }
 0x4a9   :  { %720 = vmatpush.msrb.mxu2 %v1141_v22 }
 0x4ab   :  { %721 = vmatpush.msrb.mxu2 %v1146_v23 }
 0x4ad   :  { %722 = vmatpush.msrb.mxu2 %v1153_v24 }
 0x4af   :  { %723 = vmatpush.msrb.mxu2 %v1161_v25 }
 0x4b0   :  { %943 = vmatmul.msk.f32.gmra.mxu0 %vm43_vm0, %v34_v50 }
 0x4b1   :  { %724 = vmatpush.msrb.mxu2 %v1169_v26 }
 0x4b3   :  { %725 = vmatpush.msrb.mxu2 %v1177_v27 }
 0x4b5   :  { %726 = vmatpush.msrb.mxu2 %v1185_v28 }
 0x4b7   :  { %727 = vmatpush.msrb.mxu2 %v1198_v31 }
 0x51c   :  { %v295_v11 = vpop.f32.mrf.mxu1 }
 0x51d   :  { %v298_v12 = vadd.f32 %v295_v11, %v92_v10 }
 0x51f   :  { %980 = vtanh.f32 %v298_v12 }
 0x525   :  { %v981_v13 = vpop.eup %980 }
 0x526   :  { %304 = vrot.lane.b32.xlu0 %v981_v13, %s1033_s19  ;;  %v300_v17 = vmul.f32 0.5, %v981_v13 }
 0x528   :  { %v301_v18 = vadd.f32 0.5, %v300_v17 }
 0x52a   :  { %v302_v33 = vmul.f32 %v301_v18, %v216_v54 }
 0x52b   :  { %v345_v14 = vpop.f32.mrf.mxu2 }
 0x52c   :  { %v346_v15 = vadd.f32 %v1238_v39, %v345_v14 }
 0x52e   :  { %982 = vtanh.f32 %v346_v15  ;;  %v97_v15 = vpop.f32.mrf.mxu0 }
 0x534   :  { %v983_v16 = vpop.eup %982 }
 0x535   :  { %353 = vrot.lane.b32.xlu1 %v983_v16, %s1033_s19  ;;  %v349_v21 = vmul.f32 0.5, %v983_v16  ;;  %v98_v16 = vadd.f32 %v1129_v8, %v97_v15 }
 0x537   :  { %v350_v29 = vadd.f32 0.5, %v349_v21 }
 0x539   :  { %v351_v37 = vmul.f32 %v350_v29, %v265_v58 }
 0x598   :  { %v305_v19 = vpop.permute.xlu0 %304 }
 0x599   :  { %v307_v20 = vmul.f32 %v305_v19, %v301_v18 }
 0x59b   :  { %309 = vrot.lane.b32.xlu2 %v307_v20, %s1034_s20 }
 0x5a7   :  { %v354_v30 = vpop.permute.xlu1 %353 }
 0x5a8   :  { %v356_v32 = vmul.f32 %v354_v30, %v350_v29 }
 0x5aa   :  { %358 = vrot.lane.b32.xlu0 %v356_v32, %s1034_s20 }
 0x5f5   :  { %v310_v34 = vpop.permute.xlu2 %309 }
 0x5f6   :  { %v312_v35 = vadd.f32 %v310_v34, %v302_v33 }
 0x5f8   :  { %984 = vtanh.f32 %v312_v35 }
 0x5fe   :  { %v985_v36 = vpop.eup %984 }
 0x5ff   :  { %315 = vrot.lane.b32.xlu1 %v985_v36, %s1033_s19 }
 0x61c   :  { %v359_v38 = vpop.permute.xlu0 %358 }
 0x61d   :  { %v361_v40 = vadd.f32 %v359_v38, %v351_v37 }
 0x61f   :  { %986 = vtanh.f32 %v361_v40 }
 0x625   :  { %v987_v41 = vpop.eup %986 }
 0x626   :  { %364 = vrot.lane.b32.xlu2 %v987_v41, %s1033_s19 }
 0x671   :  { %v316_v43 = vpop.permute.xlu1 %315 }
 0x672   :  { %v318_v44 = vmul.f32 %v316_v43, %v301_v18 }
 0x674   :  { %370 = vrot.lane.b32.xlu0 %v318_v44, %s1034_s20 }
 0x680   :  { %v365_v45 = vpop.permute.xlu2 %364 }
 0x681   :  { %v367_v46 = vmul.f32 %v365_v45, %v350_v29 }
 0x683   :  { %417 = vrot.lane.b32.xlu1 %v367_v46, %s1033_s19 }
 0x6e6   :  { %v371_v47 = vpop.permute.xlu0 %370 }
 0x6e7   :  { %950 = vmatmul.msk.f32.vlgmr.msra.gmra.mxu1 %vm131_vm1, %v371_v47 }
 0x6e8   :  { %578 = vmatpush.msra.mxu1 %v1083_v0 }
 0x6ea   :  { %579 = vmatpush.msra.mxu1 %v1091_v2 }
 0x6ec   :  { %580 = vmatpush.msra.mxu1 %v1103_v5 }
 0x6ee   :  { %581 = vmatpush.msra.mxu1 %v1111_v6 }
 0x6f5   :  { %v418_v48 = vpop.permute.xlu1 %417 }
 0x6f6   :  { %v420_v49 = vsel %vm131_vm1, %v371_v47, %v418_v48 }
 0x6f7   :  { %951 = vmatmul.msk.f32.vlgmr.msrb.gmra.mxu3 %vm228_vm2, %v420_v49 }
 0x6f8   :  { %816 = vmatpush.msrb.mxu3 %v1141_v22 }
 0x6fa   :  { %817 = vmatpush.msrb.mxu3 %v1146_v23 }
 0x6fc   :  { %818 = vmatpush.msrb.mxu3 %v1153_v24 }
 0x6fe   :  { %819 = vmatpush.msrb.mxu3 %v1161_v25 }
 0x700   :  { %820 = vmatpush.msrb.mxu3 %v1169_v26 }
 0x702   :  { %821 = vmatpush.msrb.mxu3 %v1177_v27 }
 0x704   :  { %822 = vmatpush.msrb.mxu3 %v1185_v28 }
 0x706   :  { %823 = vmatpush.msrb.mxu3 %v1198_v31 }
 0x764   :  { %v391_v52 = vpop.f32.mrf.mxu1 }
 0x765   :  { %v394_v53 = vadd.f32 %v391_v52, %v95_v51 }
 0x767   :  { %988 = vtanh.f32 %v394_v53 }
 0x76d   :  { %v989_v22 = vpop.eup %988 }
 0x76e   :  { %400 = vrot.lane.b32.xlu2 %v989_v22, %s1033_s19  ;;  %v396_v26 = vmul.f32 0.5, %v989_v22 }
 0x770   :  { %v397_v27 = vadd.f32 0.5, %v396_v26 }
 0x772   :  { %v398_v58 = vmul.f32 %v397_v27, %v312_v35 }
 0x77a   :  { %v441_v23 = vpop.f32.mrf.mxu3 }
 0x77b   :  { %v442_v24 = vadd.f32 %v1238_v39, %v441_v23 }
 0x77d   :  { %990 = vtanh.f32 %v442_v24  ;;  %v100_v24 = vpop.f32.mrf.mxu0 }
 0x783   :  { %v991_v25 = vpop.eup %990 }
 0x784   :  { %449 = vrot.lane.b32.xlu0 %v991_v25, %s1033_s19  ;;  %v445_v54 = vmul.f32 0.5, %v991_v25  ;;  %v101_v25 = vadd.f32 %v1129_v8, %v100_v24 }
 0x786   :  { %v446_v55 = vadd.f32 0.5, %v445_v54 }
 0x788   :  { %v447_v62 = vmul.f32 %v446_v55, %v361_v40 }
 0x7c8   :  { %v401_v28 = vpop.permute.xlu2 %400 }
 0x7c9   :  { %v403_v31 = vmul.f32 %v401_v28, %v397_v27 }
 0x7cb   :  { %405 = vrot.lane.b32.xlu1 %v403_v31, %s1034_s20 }
 0x7f6   :  { %v450_v56 = vpop.permute.xlu0 %449 }
 0x7f7   :  { %v452_v57 = vmul.f32 %v450_v56, %v446_v55 }
 0x7f9   :  { %454 = vrot.lane.b32.xlu2 %v452_v57, %s1034_s20 }
 0x83d   :  { %v406_v59 = vpop.permute.xlu1 %405 }
 0x83e   :  { %v408_v60 = vadd.f32 %v406_v59, %v398_v58 }
 0x840   :  { %992 = vtanh.f32 %v408_v60 }
 0x846   :  { %v993_v61 = vpop.eup %992 }
 0x847   :  { %411 = vrot.lane.b32.xlu0 %v993_v61, %s1033_s19 }
 0x853   :  { %v455_v63 = vpop.permute.xlu2 %454 }
 0x854   :  { %v457_v1 = vadd.f32 %v455_v63, %v447_v62 }
 0x856   :  { %994 = vtanh.f32 %v457_v1 }
 0x85c   :  { %v995_v3 = vpop.eup %994 }
 0x85d   :  { %460 = vrot.lane.b32.xlu1 %v995_v3, %s1033_s19 }
 0x8b9   :  { %v412_v7 = vpop.permute.xlu0 %411 }
 0x8ba   :  { %v414_v9 = vmul.f32 %v412_v7, %v397_v27 }
 0x8bc   :  { %466 = vrot.lane.b32.xlu2 %v414_v9, %s1034_s20 }
 0x8cf   :  { %v461_v10 = vpop.permute.xlu1 %460 }
 0x8d0   :  { %v463_v11 = vmul.f32 %v461_v10, %v446_v55 }
 0x8d2   :  { %513 = vrot.lane.b32.xlu0 %v463_v11, %s1033_s19  ;;  %v35_v11 = vld [vmem:[%s1412_s0 + $0x30] sm:$0xff] }
 0x8d3   :  { %944 = vmatmul.msk.f32.gmra.mxu0 %vm43_vm0, %v35_v11 }
 0x916   :  { %v467_v12 = vpop.permute.xlu2 %466 }
 0x917   :  { %952 = vmatmul.msk.f32.vlgmr.msrb.gmra.mxu1 %vm131_vm1, %v467_v12 }
 0x918   :  { %674 = vmatpush.msrb.mxu1 %v1083_v0 }
 0x91a   :  { %675 = vmatpush.msrb.mxu1 %v1091_v2 }
 0x91c   :  { %676 = vmatpush.msrb.mxu1 %v1103_v5 }
 0x91e   :  { %677 = vmatpush.msrb.mxu1 %v1111_v6 }
 0x944   :  { %v514_v13 = vpop.permute.xlu0 %513 }
 0x945   :  { %v516_v14 = vsel %vm131_vm1, %v467_v12, %v514_v13 }
 0x946   :  { %953 = vmatmul.msk.f32.vlgmr.msra.gmra.mxu2 %vm228_vm2, %v516_v14 }
 0x994   :  { %v487_v17 = vpop.f32.mrf.mxu1 }
 0x995   :  { %v490_v18 = vadd.f32 %v487_v17, %v98_v16  ;;  %v103_v17 = vpop.f32.mrf.mxu0 }
 0x997   :  { %996 = vtanh.f32 %v490_v18  ;;  %v104_v18 = vadd.f32 %v1129_v8, %v103_v17 }
 0x99d   :  { %v997_v19 = vpop.eup %996 }
 0x99e   :  { %496 = vrot.lane.b32.xlu1 %v997_v19, %s1033_s19  ;;  %v492_v30 = vmul.f32 0.5, %v997_v19 }
 0x9a0   :  { %v493_v32 = vadd.f32 0.5, %v492_v30 }
 0x9a2   :  { %v494_v40 = vmul.f32 %v493_v32, %v408_v60 }
 0x9c9   :  { %v537_v20 = vpop.f32.mrf.mxu2 }
 0x9ca   :  { %v538_v21 = vadd.f32 %v1238_v39, %v537_v20 }
 0x9cc   :  { %998 = vtanh.f32 %v538_v21 }
 0x9d2   :  { %v999_v29 = vpop.eup %998 }
 0x9d3   :  { %545 = vrot.lane.b32.xlu2 %v999_v29, %s1033_s19  ;;  %v541_v35 = vmul.f32 0.5, %v999_v29 }
 0x9d5   :  { %v542_v36 = vadd.f32 0.5, %v541_v35 }
 0x9d7   :  { %v543_v44 = vmul.f32 %v542_v36, %v457_v1 }
 0xa10   :  { %v497_v33 = vpop.permute.xlu1 %496 }
 0xa11   :  { %v499_v34 = vmul.f32 %v497_v33, %v493_v32 }
 0xa13   :  { %501 = vrot.lane.b32.xlu0 %v499_v34, %s1034_s20 }
 0xa2d   :  { %v546_v37 = vpop.permute.xlu2 %545 }
 0xa2e   :  { %v548_v38 = vmul.f32 %v546_v37, %v542_v36 }
 0xa30   :  { %550 = vrot.lane.b32.xlu1 %v548_v38, %s1034_s20 }
 0xa85   :  { %v502_v41 = vpop.permute.xlu0 %501 }
 0xa86   :  { %v504_v42 = vadd.f32 %v502_v41, %v494_v40 }
 0xa88   :  { %1000 = vtanh.f32 %v504_v42 }
 0xa8e   :  { %v1001_v43 = vpop.eup %1000 }
 0xa8f   :  { %507 = vrot.lane.b32.xlu2 %v1001_v43, %s1033_s19 }
 0xaa2   :  { %v551_v45 = vpop.permute.xlu1 %550 }
 0xaa3   :  { %v553_v46 = vadd.f32 %v551_v45, %v543_v44 }
 0xaa5   :  { %1002 = vtanh.f32 %v553_v46 }
 0xaab   :  { %v1003_v47 = vpop.eup %1002 }
 0xaac   :  { %556 = vrot.lane.b32.xlu0 %v1003_v47, %s1033_s19 }
 0xae9   :  { %v508_v48 = vpop.permute.xlu2 %507 }
 0xaea   :  { %v510_v49 = vmul.f32 %v508_v48, %v493_v32 }
 0xaec   :  { %562 = vrot.lane.b32.xlu1 %v510_v49, %s1034_s20 }
 0xb1e   :  { %v557_v51 = vpop.permute.xlu0 %556 }
 0xb1f   :  { %v559_v52 = vmul.f32 %v557_v51, %v542_v36 }
 0xb21   :  { %609 = vrot.lane.b32.xlu2 %v559_v52, %s1033_s19  ;;  %v36_v52 = vld [vmem:[%s1412_s0 + $0x38] sm:$0xff] }
 0xb22   :  { %945 = vmatmul.msk.f32.gmra.mxu0 %vm43_vm0, %v36_v52 }
 0xb5e   :  { %v563_v53 = vpop.permute.xlu1 %562 }
 0xb5f   :  { %954 = vmatmul.msk.f32.vlgmr.msra.gmra.mxu1 %vm131_vm1, %v563_v53 }
 0xb60   :  { %770 = vmatpush.msra.mxu1 %v1083_v0 }
 0xb62   :  { %771 = vmatpush.msra.mxu1 %v1091_v2 }
 0xb64   :  { %772 = vmatpush.msra.mxu1 %v1103_v5 }
 0xb66   :  { %773 = vmatpush.msra.mxu1 %v1111_v6 }
 0xb7b   :  { %v610_v22 = vpop.permute.xlu2 %609 }
 0xb7c   :  { %v612_v23 = vsel %vm131_vm1, %v563_v53, %v610_v22 }
 0xb7d   :  { %955 = vmatmul.msk.f32.vlgmr.msra.gmra.mxu3 %vm228_vm2, %v612_v23 }
 0xbdc   :  { %v583_v26 = vpop.f32.mrf.mxu1 }
 0xbdd   :  { %v586_v27 = vadd.f32 %v583_v26, %v101_v25  ;;  %v106_v26 = vpop.f32.mrf.mxu0 }
 0xbdf   :  { %1004 = vtanh.f32 %v586_v27  ;;  %v107_v27 = vadd.f32 %v1129_v8, %v106_v26 }
 0xbe5   :  { %v1005_v28 = vpop.eup %1004 }
 0xbe6   :  { %592 = vrot.lane.b32.xlu0 %v1005_v28, %s1033_s19  ;;  %v588_v6 = vmul.f32 0.5, %v1005_v28 }
 0xbe8   :  { %v589_v31 = vadd.f32 0.5, %v588_v6 }
 0xbea   :  { %v590_v60 = vmul.f32 %v589_v31, %v504_v42 }
 0xc00   :  { %v633_v0 = vpop.f32.mrf.mxu3 }
 0xc01   :  { %v634_v2 = vadd.f32 %v1238_v39, %v633_v0 }
 0xc03   :  { %1006 = vtanh.f32 %v634_v2 }
 0xc09   :  { %v1007_v5 = vpop.eup %1006 }
 0xc0a   :  { %641 = vrot.lane.b32.xlu1 %v1007_v5, %s1033_s19  ;;  %v637_v56 = vmul.f32 0.5, %v1007_v5 }
 0xc0c   :  { %v638_v57 = vadd.f32 0.5, %v637_v56 }
 0xc0e   :  { %v639_v1 = vmul.f32 %v638_v57, %v553_v46 }
 0xc58   :  { %v593_v54 = vpop.permute.xlu0 %592 }
 0xc59   :  { %v595_v55 = vmul.f32 %v593_v54, %v589_v31 }
 0xc5b   :  { %597 = vrot.lane.b32.xlu2 %v595_v55, %s1034_s20 }
 0xc7c   :  { %v642_v58 = vpop.permute.xlu1 %641 }
 0xc7d   :  { %v644_v59 = vmul.f32 %v642_v58, %v638_v57 }
 0xc7f   :  { %646 = vrot.lane.b32.xlu0 %v644_v59, %s1034_s20 }
 0xcb5   :  { %v598_v61 = vpop.permute.xlu2 %597 }
 0xcb6   :  { %v600_v62 = vadd.f32 %v598_v61, %v590_v60 }
 0xcb8   :  { %1008 = vtanh.f32 %v600_v62 }
 0xcbe   :  { %v1009_v63 = vpop.eup %1008 }
 0xcbf   :  { %603 = vrot.lane.b32.xlu1 %v1009_v63, %s1033_s19 }
 0xcf1   :  { %v647_v3 = vpop.permute.xlu0 %646 }
 0xcf2   :  { %v649_v4 = vadd.f32 %v647_v3, %v639_v1 }
 0xcf4   :  { %1010 = vtanh.f32 %v649_v4 }
 0xcfa   :  { %v1011_v7 = vpop.eup %1010 }
 0xcfb   :  { %652 = vrot.lane.b32.xlu2 %v1011_v7, %s1033_s19 }
 0xd31   :  { %v604_v9 = vpop.permute.xlu1 %603 }
 0xd32   :  { %v606_v10 = vmul.f32 %v604_v9, %v589_v31 }
 0xd34   :  { %658 = vrot.lane.b32.xlu0 %v606_v10, %s1034_s20 }
 0xd55   :  { %v653_v12 = vpop.permute.xlu2 %652 }
 0xd56   :  { %v655_v13 = vmul.f32 %v653_v12, %v638_v57 }
 0xd58   :  { %705 = vrot.lane.b32.xlu1 %v655_v13, %s1033_s19 }
 0xda6   :  { %v659_v14 = vpop.permute.xlu0 %658 }
 0xda7   :  { %956 = vmatmul.msk.f32.vlgmr.msrb.gmra.mxu1 %vm131_vm1, %v659_v14 }
 0xdca   :  { %v706_v15 = vpop.permute.xlu1 %705 }
 0xdcb   :  { %v708_v16 = vsel %vm131_vm1, %v659_v14, %v706_v15 }
 0xdcc   :  { %957 = vmatmul.msk.f32.vlgmr.msrb.gmra.mxu2 %vm228_vm2, %v708_v16 }
 0xe24   :  { %v679_v19 = vpop.f32.mrf.mxu1 }
 0xe25   :  { %v682_v20 = vadd.f32 %v679_v19, %v104_v18 }
 0xe27   :  { %1012 = vtanh.f32 %v682_v20 }
 0xe2d   :  { %v1013_v21 = vpop.eup %1012 }
 0xe2e   :  { %688 = vrot.lane.b32.xlu2 %v1013_v21, %s1033_s19  ;;  %v684_v33 = vmul.f32 0.5, %v1013_v21 }
 0xe30   :  { %v685_v34 = vadd.f32 0.5, %v684_v33 }
 0xe32   :  { %v686_v42 = vmul.f32 %v685_v34, %v600_v62 }
 0xe4f   :  { %v729_v29 = vpop.f32.mrf.mxu2 }
 0xe50   :  { %v730_v30 = vadd.f32 %v1238_v39, %v729_v29 }
 0xe52   :  { %1014 = vtanh.f32 %v730_v30 }
 0xe58   :  { %v1015_v32 = vpop.eup %1014 }
 0xe59   :  { %737 = vrot.lane.b32.xlu0 %v1015_v32, %s1033_s19  ;;  %v733_v37 = vmul.f32 0.5, %v1015_v32 }
 0xe5b   :  { %v734_v38 = vadd.f32 0.5, %v733_v37  ;;  %v901_v37 = vld [vmem:[%s1416_s6 + $0x8] sm:$0xff] }
 0xe5d   :  { %v735_v46 = vmul.f32 %v734_v38, %v649_v4 }
 0xe88   :  { %v689_v35 = vpop.permute.xlu2 %688 }
 0xe89   :  { %v691_v36 = vmul.f32 %v689_v35, %v685_v34 }
 0xe8b   :  { %693 = vrot.lane.b32.xlu1 %v691_v36, %s1034_s20  ;;  %v902_v36 = vld [vmem:[%s1416_s6 + $0x10] sm:$0xff] }
 0xecb   :  { %v738_v40 = vpop.permute.xlu0 %737 }
 0xecc   :  { %v740_v41 = vmul.f32 %v738_v40, %v734_v38 }
 0xece   :  { %742 = vrot.lane.b32.xlu2 %v740_v41, %s1034_s20 }
 0xefd   :  { %v694_v43 = vpop.permute.xlu1 %693 }
 0xefe   :  { %v696_v44 = vadd.f32 %v694_v43, %v686_v42  ;;  %v967_v43 = vld [vmem:[%s1417_s7] ss:$0 sm:$0xff] }
 0xf00   :  { %1016 = vtanh.f32 %v696_v44 }
 0xf06   :  { %v1017_v45 = vpop.eup %1016 }
 0xf07   :  { %699 = vrot.lane.b32.xlu0 %v1017_v45, %s1033_s19 }
 0xf28   :  { %v743_v47 = vpop.permute.xlu2 %742 }
 0xf29   :  { %v745_v48 = vadd.f32 %v743_v47, %v735_v46 }
 0xf2b   :  { %1018 = vtanh.f32 %v745_v48 }
 0xf31   :  { %v1019_v49 = vpop.eup %1018 }
 0xf32   :  { %748 = vrot.lane.b32.xlu1 %v1019_v49, %s1033_s19 }
 0xf79   :  { %v700_v50 = vpop.permute.xlu0 %699 }
 0xf7a   :  { %v702_v51 = vmul.f32 %v700_v50, %v685_v34 }
 0xf7c   :  { %754 = vrot.lane.b32.xlu2 %v702_v51, %s1034_s20 }
 0xfa4   :  { %v749_v53 = vpop.permute.xlu1 %748 }
 0xfa5   :  { %v751_v22 = vmul.f32 %v749_v53, %v734_v38  ;;  %v900_v38 = vld [vmem:[%s1416_s6] sm:$0xff] }
 0xfa7   :  { %801 = vrot.lane.b32.xlu0 %v751_v22, %s1033_s19 }
 0xfd6   :  { %v755_v23 = vpop.permute.xlu2 %754 }
 0xfd7   :  { %958 = vmatmul.msk.f32.vlgmr.msra.gmra.mxu1 %vm131_vm1, %v755_v23 }
0x1019   :  { %v802_v24 = vpop.permute.xlu0 %801 }
0x101a   :  { %v804_v25 = vsel %vm131_vm1, %v755_v23, %v802_v24 }
0x101b   :  { %959 = vmatmul.msk.f32.vlgmr.msrb.gmra.mxu3 %vm228_vm2, %v804_v25 }
0x1054   :  { %v775_v28 = vpop.f32.mrf.mxu1 }
0x1055   :  { %v778_v0 = vadd.f32 %v775_v28, %v107_v27 }
0x1057   :  { %1020 = vtanh.f32 %v778_v0 }
0x105d   :  { %v1021_v2 = vpop.eup %1020 }
0x105e   :  { %784 = vrot.lane.b32.xlu1 %v1021_v2, %s1033_s19  ;;  %v780_v54 = vmul.f32 0.5, %v1021_v2 }
0x1060   :  { %v781_v55 = vadd.f32 0.5, %v780_v54 }
0x1062   :  { %v782_v61 = vmul.f32 %v781_v55, %v696_v44 }
0x109e   :  { %v825_v5 = vpop.f32.mrf.mxu3 }
0x109f   :  { %v826_v6 = vadd.f32 %v1238_v39, %v825_v5 }
0x10a1   :  { %1022 = vtanh.f32 %v826_v6 }
0x10a7   :  { %v1023_v31 = vpop.eup %1022 }
0x10a8   :  { %833 = vrot.lane.b32.xlu2 %v1023_v31, %s1033_s19  ;;  %v829_v8 = vmul.f32 0.5, %v1023_v31 }
0x10aa   :  { %v830_v58 = vadd.f32 0.5, %v829_v8 }
0x10ac   :  { %v831_v3 = vmul.f32 %v830_v58, %v745_v48 }
0x10d0   :  { %v785_v56 = vpop.permute.xlu1 %784 }
0x10d1   :  { %v787_v57 = vmul.f32 %v785_v56, %v781_v55 }
0x10d3   :  { %789 = vrot.lane.b32.xlu0 %v787_v57, %s1034_s20 }
0x1102   :  { %v834_v59 = vpop.permute.xlu2 %833 }
0x1103   :  { %v836_v60 = vmul.f32 %v834_v59, %v830_v58 }
0x1105   :  { %838 = vrot.lane.b32.xlu1 %v836_v60, %s1034_s20 }
0x1145   :  { %v790_v62 = vpop.permute.xlu0 %789 }
0x1146   :  { %v792_v63 = vadd.f32 %v790_v62, %v782_v61 }
0x1148   :  { %1024 = vtanh.f32 %v792_v63 }
0x114e   :  { %v1025_v1 = vpop.eup %1024 }
0x114f   :  { %795 = vrot.lane.b32.xlu2 %v1025_v1, %s1033_s19 }
0x1177   :  { %v839_v4 = vpop.permute.xlu1 %838 }
0x1178   :  { %v841_v7 = vadd.f32 %v839_v4, %v831_v3 }
0x117a   :  { %1026 = vtanh.f32 %v841_v7 }
0x1180   :  { %v1027_v9 = vpop.eup %1026 }
0x1181   :  { %844 = vrot.lane.b32.xlu0 %v1027_v9, %s1033_s19 }
0x11a9   :  { %v796_v10 = vpop.permute.xlu2 %795 }
0x11aa   :  { %v798_v11 = vmul.f32 %v796_v10, %v781_v55 }
0x11ac   :  { %849 = vrot.lane.b32.xlu1 %v798_v11, %s1034_s20 }
0x11f3   :  { %v845_v12 = vpop.permute.xlu0 %844 }
0x11f4   :  { %v847_v13 = vmul.f32 %v845_v12, %v830_v58 }
0x11f6   :  { %853 = vrot.lane.b32.xlu2 %v847_v13, %s1033_s19 }
0x121e   :  { %v850_v14 = vpop.permute.xlu1 %849 }
0x1250   :  { %v854_v15 = vpop.permute.xlu2 %853 }
0x1251   :  { %v856_v16 = vsel %vm131_vm1, %v850_v14, %v854_v15 }
0x1252   :  { %960 = vmatmul.msk.f32.vlgmr.msrb.gmra.mxu0 %vm228_vm2, %v856_v16 }
0x12cf   :  { %v877_v17 = vpop.f32.mrf.mxu0 }
0x12d0   :  { %v878_v18 = vadd.f32 %v1238_v39, %v877_v17  ;;  %v903_v39 = vld [vmem:[%s1416_s6 + $0x18] sm:$0xff] }
0x12d1   :  { %925 = vmatpush.msrb.mxu1 %v903_v39 }
0x12d2   :  { %1028 = vtanh.f32 %v878_v18 }
0x12d3   :  { %926 = vmatpush.msrb.mxu1 %v902_v36 }
0x12d5   :  { %927 = vmatpush.msrb.mxu1 %v901_v37 }
0x12d7   :  { %928 = vmatpush.msrb.mxu1 %v900_v38 }
0x12d8   :  { %v1029_v19 = vpop.eup %1028 }
0x12d9   :  { %885 = vrot.lane.b32.xlu0 %v1029_v19, %s1033_s19  ;;  %v881_v20 = vmul.f32 0.5, %v1029_v19 }
0x12db   :  { %v882_v21 = vadd.f32 0.5, %v881_v20 }
0x12dd   :  { %v883_v32 = vmul.f32 %v882_v21, %v841_v7 }
0x134b   :  { %v886_v29 = vpop.permute.xlu0 %885 }
0x134c   :  { %v888_v30 = vmul.f32 %v886_v29, %v882_v21 }
0x134e   :  { %890 = vrot.lane.b32.xlu1 %v888_v30, %s1034_s20 }
0x13c0   :  { %v891_v33 = vpop.permute.xlu1 %890 }
0x13c1   :  { %v893_v34 = vadd.f32 %v891_v33, %v883_v32 }
0x13c3   :  { %1030 = vtanh.f32 %v893_v34 }
0x13c9   :  { %v1031_v35 = vpop.eup %1030 }
0x13ca   :  { %896 = vrot.lane.b32.xlu2 %v1031_v35, %s1033_s19 }
0x1424   :  { %v897_v40 = vpop.permute.xlu2 %896 }
0x1425   :  { %v899_v41 = vmul.f32 %v897_v40, %v882_v21 }
0x1427   :  { %909 = vrot.lane.b32.xlu0 %v899_v41, %s1034_s20 }
0x1499   :  { %v910_v42 = vpop.permute.xlu0 %909 }
0x149a   :  { %961 = vmatmul.msk.f32.vlgmr.msrb.gmra.mxu1 %vm131_vm1, %v910_v42 }
0x1517   :  { %v930_v44 = vpop.f32.mrf.mxu1 }
0x1518   :  { %v931_v45 = vadd.f32 %v967_v43, %v930_v44 }
0x151a   :  { %933 = vst [vmem:[%s1418_s8] sm:$0xff] %v931_v45 }

</bundles_post_ra>
